<compile_context>
chip_gen: v5e
topology: v5e:2x2
jax: 0.10.0
libtpu: 0.0.40
codegen_flags: <defaults>
</compile_context>

<pallas_src>
import functools
import math

import jax
import jax.numpy as jnp
from jax.experimental import pallas as pl
from jax.experimental.pallas import tpu as pltpu


# --------------------------------------------------------------------------
# Fused kernel: encoder -> fc_mu/fc_logvar -> reparameterize -> decoder
# --------------------------------------------------------------------------
def _vaeconv_kernel(*refs, n_layer, variational, T, L, Dt, Cpad):
    if variational:
        x_ref, eps_ref, w_ref, b_ref, rec_ref, zml_ref = refs
    else:
        x_ref, w_ref, b_ref, rec_ref, zml_ref = refs
        eps_ref = None

    M = x_ref.shape[0]                      # folded rows = Bc * T

    # Per-sequence border masks: zero the rows where the +-1 temporal roll would wrap
    # across a sequence (or block) boundary -> exact Conv1d(zero padding=1) semantics.
    rows = jax.lax.broadcasted_iota(jnp.int32, (M, 1), 0)
    tpos = rows % T
    mdn = (tpos != 0).astype(jnp.float32)        # kills x[t-1] tap at t == 0
    mup = (tpos != T - 1).astype(jnp.float32)    # kills x[t+1] tap at t == T-1

    idx = [0]

    def nxt():
        i = idx[0]
        idx[0] += 1
        return i

    def matmul(h, i):                       # one wide MXU push per layer
        return jnp.dot(h.astype(jnp.bfloat16), w_ref[i],
                       preferred_element_type=jnp.float32)

    def conv3(h, i):
        # Conv1d(k=3, s=1, p=1): taps [W_{t-1} | W_t | W_{t+1}] concatenated on cols.
        a = matmul(h, i)                    # (M, 3*Cpad)
        y = (mdn * pltpu.roll(a[:, :Cpad], shift=1, axis=0)            # picks a0[t-1]
             + a[:, Cpad:2 * Cpad]                                      # a1[t]
             + mup * pltpu.roll(a[:, 2 * Cpad:3 * Cpad], shift=M - 1, axis=0)  # a2[t+1]
             + b_ref[i][:, :Cpad])
        return y

    def lrelu(v):
        return jnp.where(v >= 0.0, v, 0.2 * v)

    def resblock(h):
        t1 = lrelu(conv3(h, nxt()))
        return h + conv3(t1, nxt())

    # ---- encoder (VQEncoderV3): n_layer x [conv -> lrelu -> ResBlock]
    # TODO(synk): at production widths (L >= 128) convert these unrolled loops to
    # lax.fori_loop over stacked per-layer slabs to bound live ranges / compile time.
    h = x_ref[...]                          # (M, Cpad) f32, zero-padded beyond Dt
    for _ in range(n_layer):
        h = lrelu(conv3(h, nxt()))
        h = resblock(h)

    # ---- variational head: fused [fc_mu | fc_logvar] matmul + reparameterize
    if variational:
        i = nxt()
        ml = matmul(h, i)                   # valid columns [:2L] = [mu | logvar]
        bml = b_ref[i]
        mu = ml[:, :L] + bml[:, :L]
        logvar = ml[:, L:2 * L] + bml[:, L:2 * L]
        z = mu + eps_ref[...] * jnp.exp(0.5 * logvar)
        zml_ref[:, :L] = z
        zml_ref[:, L:2 * L] = mu
        zml_ref[:, 2 * L:3 * L] = logvar
        if Cpad > L:
            h = jnp.concatenate([z, jnp.zeros((M, Cpad - L), jnp.float32)], axis=-1)
        else:
            h = z
    else:
        zml_ref[...] = h[:, :L]             # pre_latent passes straight through

    # ---- decoder (VQDecoderV3): 2 ResBlocks, n_layer x [conv -> lrelu], final conv
    for _ in range(2):
        h = resblock(h)
    for _ in range(n_layer):
        h = lrelu(conv3(h, nxt()))
    y = conv3(h, nxt())
    rec_ref[...] = y[:, :Dt]


# --------------------------------------------------------------------------
# Wrapper
# --------------------------------------------------------------------------
def vaeconv_forward(x, eps, w_slab, b_slab, *, vae_length, n_layer, variational=True):
    """x: (B, T, test_dim) f32; eps: (B, T, L) f32 Gaussian noise (if variational)."""
    B, T, Dt = x.shape
    L = vae_length
    Cpad = int(w_slab.shape[1])             # = max(Dt, L), set by init_params

    # Fold batch into the matmul row dim: target ~256 rows per block, but keep >=2
    # grid steps (v7x megacore) whenever there are >=2 batch elements.
    Bc = max(1, min(B, max(1, 256 // T)))
    if B >= 2:
        Bc = min(Bc, (B + 1) // 2)
    if (Bc * T) % 8 != 0:
        Bc = B                              # single full block (layout-exempt)
    nblk = -(-B // Bc)
    Bp = nblk * Bc
    Mrows = Bc * T

    xf = x
    if Cpad > Dt:
        xf = jnp.pad(xf, ((0, 0), (0, 0), (0, Cpad - Dt)))
    if Bp > B:
        xf = jnp.pad(xf, ((0, Bp - B), (0, 0), (0, 0)))
    xf = xf.reshape(Bp * T, Cpad)

    inputs = [xf]
    in_specs = [pl.BlockSpec((Mrows, Cpad), lambda i: (i, 0))]
    if variational:
        ef = eps if Bp == B else jnp.pad(eps, ((0, Bp - B), (0, 0), (0, 0)))
        ef = ef.reshape(Bp * T, L)
        inputs.append(ef)
        in_specs.append(pl.BlockSpec((Mrows, L), lambda i: (i, 0)))
    inputs += [w_slab, b_slab]
    in_specs += [pl.BlockSpec(w_slab.shape, lambda i: (0, 0, 0)),
                 pl.BlockSpec(b_slab.shape, lambda i: (0, 0, 0))]

    zw = 3 * L if variational else L
    out_shape = (jax.ShapeDtypeStruct((Bp * T, Dt), jnp.float32),   # rec_pose
                 jax.ShapeDtypeStruct((Bp * T, zw), jnp.float32))   # [z | mu | logvar]
    out_specs = (pl.BlockSpec((Mrows, Dt), lambda i: (i, 0)),
                 pl.BlockSpec((Mrows, zw), lambda i: (i, 0)))

    n_e = int(w_slab.shape[0])
    flops = 2 * (Bp * T) * Cpad * (3 * Cpad) * n_e
    transc = (Bp * T) * L if variational else 0
    bytes_acc = (sum(int(a.size) * a.dtype.itemsize for a in inputs)
                 + sum(int(math.prod(s.shape)) * 4 for s in out_shape))

    rec, zml = pl.pallas_call(
        functools.partial(_vaeconv_kernel, n_layer=n_layer, variational=variational,
                          T=T, L=L, Dt=Dt, Cpad=Cpad),
        out_shape=out_shape,
        grid=(nblk,),
        in_specs=in_specs,
        out_specs=out_specs,
        compiler_params=pltpu.CompilerParams(dimension_semantics=("parallel",)),
        cost_estimate=pl.CostEstimate(flops=int(flops), transcendentals=int(transc),
                                      bytes_accessed=int(bytes_acc)),
    )(*inputs)

    rec = rec.reshape(Bp, T, Dt)[:B]
    zml = zml.reshape(Bp, T, zw)[:B]
    if variational:
        return {"poses_feat": zml[..., :L], "rec_pose": rec,
                "pose_mu": zml[..., L:2 * L], "pose_logvar": zml[..., 2 * L:]}
    return {"poses_feat": zml, "rec_pose": rec, "pose_mu": None, "pose_logvar": None}


# --------------------------------------------------------------------------
# Deterministic synthetic parameters (shapes follow the PyTorch module __init__)
# --------------------------------------------------------------------------
def init_params(key, cfg):
    """Packed slabs for the kernel + raw f32 params for the pure-JAX reference.

    w_slab[i]: (Cpad, 3*Cpad) bf16, conv taps [W_{t-1} | W_t | W_{t+1}] at column
               offsets 0 / Cpad / 2*Cpad (zero padded).  The fc entry stores
               [W_mu | W_logvar] at offsets 0 / L.
    b_slab[i]: (1, Bw) f32 bias, zero padded.
    When importing a real PyTorch checkpoint: Conv1d weight is (Cout, Cin, 3) with
    cross-correlation, so tap k maps to w3[k] = W[:, :, k].T and k=0 is the W_{t-1}
    block; LeakyReLU negative_slope is 0.2.
    """
    Dt, L, n_layer = cfg["vae_test_dim"], cfg["vae_length"], cfg["vae_layer"]
    variational = cfg["variational"]
    Cpad = max(Dt, L)
    Bw = max(Cpad, 2 * L) if variational else Cpad

    w_entries, b_entries, raw = [], [], []

    def add_conv(k, cin, cout):
        kw, kb = jax.random.split(k)
        bound = 1.0 / math.sqrt(cin * 3)
        w3 = jax.random.uniform(kw, (3, cin, cout), jnp.float32, -bound, bound)
        b = jax.random.uniform(kb, (cout,), jnp.float32, -bound, bound)
        we = jnp.zeros((Cpad, 3 * Cpad), jnp.float32)
        for t in range(3):
            we = we.at[:cin, t * Cpad:t * Cpad + cout].set(w3[t])
        be = jnp.zeros((1, Bw), jnp.float32).at[0, :cout].set(b)
        w_entries.append(we)
        b_entries.append(be)
        raw.append(("conv", w3, b))

    def add_fc(k, dim):
        k1, k2, k3, k4 = jax.random.split(k, 4)
        bound = 1.0 / math.sqrt(dim)
        w_mu = jax.random.uniform(k1, (dim, dim), jnp.float32, -bound, bound)
        b_mu = jax.random.uniform(k2, (dim,), jnp.float32, -bound, bound)
        w_lv = jax.random.uniform(k3, (dim, dim), jnp.float32, -bound, bound)
        b_lv = jax.random.uniform(k4, (dim,), jnp.float32, -bound, bound)
        we = jnp.zeros((Cpad, 3 * Cpad), jnp.float32)
        we = we.at[:dim, :dim].set(w_mu).at[:dim, dim:2 * dim].set(w_lv)
        be = jnp.zeros((1, Bw), jnp.float32)
        be = be.at[0, :dim].set(b_mu).at[0, dim:2 * dim].set(b_lv)
        w_entries.append(we)
        b_entries.append(be)
        raw.append(("fc", w_mu, b_mu, w_lv, b_lv))

    # encoder: n_layer x [Conv(cin->L), ResBlock(L) = 2 convs]
    cin = Dt
    for _ in range(n_layer):
        key, k1, k2, k3 = jax.random.split(key, 4)
        add_conv(k1, cin, L); add_conv(k2, L, L); add_conv(k3, L, L)
        cin = L
    # fc_mu / fc_logvar
    if variational:
        key, kf = jax.random.split(key)
        add_fc(kf, L)
    # decoder: 2 ResBlocks(L); n_layer convs over [L]*n_layer + [Dt]; final Conv(Dt->Dt)
    for _ in range(2):
        key, k1, k2 = jax.random.split(key, 3)
        add_conv(k1, L, L); add_conv(k2, L, L)
    chans = [L] * n_layer + [Dt]
    for i in range(n_layer):
        key, kc = jax.random.split(key)
        add_conv(kc, chans[i], chans[i + 1])
    key, kf = jax.random.split(key)
    add_conv(kf, Dt, Dt)

    w_slab = jnp.stack(w_entries).astype(jnp.bfloat16)   # (n_e, Cpad, 3*Cpad)
    b_slab = jnp.stack(b_entries)                         # (n_e, 1, Bw) f32
    return w_slab, b_slab, raw


# --------------------------------------------------------------------------
# Pure-JAX f32 reference (same layer structure, unpadded weights)
# --------------------------------------------------------------------------
def ref_forward(x, eps, raw, *, n_layer, variational):
    it = iter(raw)

    def conv(h):
        _, w3, b = next(it)
        hp = jnp.pad(h, ((0, 0), (1, 1), (0, 0)))
        return hp[:, :-2] @ w3[0] + hp[:, 1:-1] @ w3[1] + hp[:, 2:] @ w3[2] + b

    def lrelu(v):
        return jnp.where(v >= 0.0, v, 0.2 * v)

    def res(h):
        t = lrelu(conv(h))
        return h + conv(t)

    h = x
    for _ in range(n_layer):
        h = lrelu(conv(h))
        h = res(h)
    mu = logvar = None
    if variational:
        _, w_mu, b_mu, w_lv, b_lv = next(it)
        mu = h @ w_mu + b_mu
        logvar = h @ w_lv + b_lv
        h = mu + eps * jnp.exp(0.5 * logvar)
    z = h
    for _ in range(2):
        h = res(h)
    for _ in range(n_layer):
        h = lrelu(conv(h))
    rec = conv(h)
    return {"poses_feat": z, "rec_pose": rec, "pose_mu": mu, "pose_logvar": logvar}


# --------------------------------------------------------------------------
if __name__ == "__main__":
    cfg = {
        "vae_test_dim": 12,   # pose feature dim
        "vae_length": 32,     # latent width (fc_mu / fc_logvar size)
        "vae_layer": 2,       # number of encoder/decoder conv stages
        "variational": True,
    }
    B, T = 2, 16

    key = jax.random.PRNGKey(0)
    kp, kx, ke = jax.random.split(key, 3)
    w_slab, b_slab, raw = init_params(kp, cfg)
    x = jax.random.normal(kx, (B, T, cfg["vae_test_dim"]), jnp.float32)
    eps = jax.random.normal(ke, (B, T, cfg["vae_length"]), jnp.float32)

    fwd = jax.jit(functools.partial(
        vaeconv_forward, vae_length=cfg["vae_length"],
        n_layer=cfg["vae_layer"], variational=cfg["variational"]))
    out = jax.block_until_ready(fwd(x, eps, w_slab, b_slab))

    assert out["rec_pose"].shape == (B, T, cfg["vae_test_dim"])
    assert out["poses_feat"].shape == (B, T, cfg["vae_length"])
    assert out["pose_mu"].shape == (B, T, cfg["vae_length"])
    assert out["pose_logvar"].shape == (B, T, cfg["vae_length"])

    # f32 reference check (kernel feeds the MXU in bf16 -> loose absolute tolerance).
    ref = ref_forward(x, eps, raw, n_layer=cfg["vae_layer"],
                      variational=cfg["variational"])
    for k in ("rec_pose", "poses_feat", "pose_mu", "pose_logvar"):
        assert bool(jnp.all(jnp.isfinite(out[k]))), f"{k} not finite"
        diff = float(jnp.max(jnp.abs(out[k] - ref[k])))
        assert diff < 0.25, f"{k} max|diff|={diff}"

    print("KERNEL_OK")
</pallas_src>

<mosaic_0001>
module attributes {stable_mosaic.version = 11 : i64} {
  func.func @_vaeconv_kernel(%arg0: i32, %arg1: memref<16x32xf32, #tpu.memory_space<vmem>>, %arg2: memref<16x32xf32, #tpu.memory_space<vmem>>, %arg3: memref<14x32x96xbf16, #tpu.memory_space<vmem>>, %arg4: memref<14x1x64xf32, #tpu.memory_space<vmem>>, %arg5: memref<16x12xf32, #tpu.memory_space<vmem>>, %arg6: memref<16x96xf32, #tpu.memory_space<vmem>>) attributes {dimension_semantics = [#tpu.dimension_semantics<parallel>], iteration_bounds = array<i64: 2>, scalar_prefetch = 0 : i64, scratch_operands = 0 : i64, tpu.core_type = #tpu.core_type<tc>, window_params = [{transform_indices = @transform_0, window_bounds = array<i64: 16, 32>}, {transform_indices = @transform_1, window_bounds = array<i64: 16, 32>}, {pipeline_mode = #tpu.pipeline_mode<synchronous>, transform_indices = @transform_2, window_bounds = array<i64: 14, 32, 96>}, {pipeline_mode = #tpu.pipeline_mode<synchronous>, transform_indices = @transform_3, window_bounds = array<i64: 14, 1, 64>}, {transform_indices = @transform_4, window_bounds = array<i64: 16, 12>}, {transform_indices = @transform_5, window_bounds = array<i64: 16, 96>}]} {
    %0 = tpu.iota {dimensions = array<i32: 0>} : vector<16x1xi32>
    %c16_i32 = arith.constant 16 : i32
    %c0_i32 = arith.constant 0 : i32
    %1 = arith.cmpi eq, %c16_i32, %c0_i32 : i32
    %c1_i32 = arith.constant 1 : i32
    %2 = arith.select %1, %c1_i32, %c16_i32 : i32
    %3 = vector.broadcast %2 : i32 to vector<16x1xi32>
    %4 = arith.remsi %0, %3 : vector<16x1xi32>
    %c0_i32_0 = arith.constant 0 : i32
    %5 = vector.broadcast %c0_i32_0 : i32 to vector<16x1xi32>
    %6 = arith.cmpi ne, %4, %5 : vector<16x1xi32>
    %c0_i32_1 = arith.constant 0 : i32
    %7 = vector.broadcast %c0_i32_1 : i32 to vector<16x1xi32>
    %8 = arith.cmpi slt, %4, %7 : vector<16x1xi32>
    %c0_i32_2 = arith.constant 0 : i32
    %9 = arith.cmpi slt, %2, %c0_i32_2 : i32
    %10 = vector.broadcast %9 : i1 to vector<16x1xi1>
    %11 = vector.broadcast %10 : vector<16x1xi1> to vector<16x1xi1>
    %12 = arith.xori %8, %11 : vector<16x1xi1>
    %13 = arith.andi %12, %6 : vector<16x1xi1>
    %14 = vector.broadcast %2 : i32 to vector<16x1xi32>
    %15 = arith.addi %4, %14 : vector<16x1xi32>
    %16 = arith.select %13, %15, %4 : vector<16x1xi1>, vector<16x1xi32>
    %c0_i32_3 = arith.constant 0 : i32
    %17 = vector.broadcast %c0_i32_3 : i32 to vector<16x1xi32>
    %18 = arith.cmpi ne, %16, %17 : vector<16x1xi32>
    %19 = arith.extui %18 : vector<16x1xi1> to vector<16x1xi32>
    %20 = arith.sitofp %19 : vector<16x1xi32> to vector<16x1xf32>
    %c15_i32 = arith.constant 15 : i32
    %21 = vector.broadcast %c15_i32 : i32 to vector<16x1xi32>
    %22 = arith.cmpi ne, %16, %21 : vector<16x1xi32>
    %23 = arith.extui %22 : vector<16x1xi1> to vector<16x1xi32>
    %24 = arith.sitofp %23 : vector<16x1xi32> to vector<16x1xf32>
    %c0 = arith.constant 0 : index
    %c0_4 = arith.constant 0 : index
    %25 = vector.load %arg1[%c0, %c0_4] : memref<16x32xf32, #tpu.memory_space<vmem>>, vector<16x32xf32>
    %26 = arith.truncf %25 : vector<16x32xf32> to vector<16x32xbf16>
    %c0_5 = arith.constant 0 : index
    %c0_6 = arith.constant 0 : index
    %c0_7 = arith.constant 0 : index
    %27 = vector.load %arg3[%c0_5, %c0_6, %c0_7] : memref<14x32x96xbf16, #tpu.memory_space<vmem>>, vector<1x32x96xbf16>
    %28 = vector.shape_cast %27 : vector<1x32x96xbf16> to vector<32x96xbf16>
    %cst = arith.constant dense<0.000000e+00> : vector<16x96xf32>
    %29 = tpu.matmul %26, %28, %cst {dimension_numbers = #tpu.dot_dimension_numbers<[1], [0], [0], [1], [0, 0, 1, 1], [], []>} : vector<16x32xbf16>, vector<32x96xbf16>, vector<16x96xf32> -> vector<16x96xf32>
    %30 = vector.extract_strided_slice %29 {offsets = [0, 0], sizes = [16, 32], strides = [1, 1]} : vector<16x96xf32> to vector<16x32xf32>
    %c1_i32_8 = arith.constant 1 : i32
    %31 = tpu.dynamic_rotate %30 by %c1_i32_8 dim 0 : vector<16x32xf32>, i32 -> vector<16x32xf32>
    %32 = vector.broadcast %20 : vector<16x1xf32> to vector<16x32xf32>
    %33 = arith.mulf %32, %31 : vector<16x32xf32>
    %34 = vector.extract_strided_slice %29 {offsets = [0, 32], sizes = [16, 32], strides = [1, 1]} : vector<16x96xf32> to vector<16x32xf32>
    %35 = arith.addf %33, %34 : vector<16x32xf32>
    %36 = vector.extract_strided_slice %29 {offsets = [0, 64], sizes = [16, 32], strides = [1, 1]} : vector<16x96xf32> to vector<16x32xf32>
    %c15_i32_9 = arith.constant 15 : i32
    %37 = tpu.dynamic_rotate %36 by %c15_i32_9 dim 0 : vector<16x32xf32>, i32 -> vector<16x32xf32>
    %38 = vector.broadcast %24 : vector<16x1xf32> to vector<16x32xf32>
    %39 = arith.mulf %38, %37 : vector<16x32xf32>
    %40 = arith.addf %35, %39 : vector<16x32xf32>
    %c0_10 = arith.constant 0 : index
    %c0_11 = arith.constant 0 : index
    %c0_12 = arith.constant 0 : index
    %41 = vector.load %arg4[%c0_10, %c0_11, %c0_12] : memref<14x1x64xf32, #tpu.memory_space<vmem>>, vector<1x1x64xf32>
    %42 = vector.shape_cast %41 : vector<1x1x64xf32> to vector<1x64xf32>
    %43 = vector.extract_strided_slice %42 {offsets = [0, 0], sizes = [1, 32], strides = [1, 1]} : vector<1x64xf32> to vector<1x32xf32>
    %44 = vector.broadcast %43 : vector<1x32xf32> to vector<16x32xf32>
    %45 = arith.addf %40, %44 : vector<16x32xf32>
    %cst_13 = arith.constant 0.000000e+00 : f32
    %46 = vector.broadcast %cst_13 : f32 to vector<16x32xf32>
    %47 = arith.cmpf oge, %45, %46 : vector<16x32xf32>
    %cst_14 = arith.constant 2.000000e-01 : f32
    %48 = vector.broadcast %cst_14 : f32 to vector<16x32xf32>
    %49 = arith.mulf %48, %45 : vector<16x32xf32>
    %50 = arith.select %47, %45, %49 : vector<16x32xi1>, vector<16x32xf32>
    %51 = arith.truncf %50 : vector<16x32xf32> to vector<16x32xbf16>
    %c1 = arith.constant 1 : index
    %c0_15 = arith.constant 0 : index
    %c0_16 = arith.constant 0 : index
    %52 = vector.load %arg3[%c1, %c0_15, %c0_16] : memref<14x32x96xbf16, #tpu.memory_space<vmem>>, vector<1x32x96xbf16>
    %53 = vector.shape_cast %52 : vector<1x32x96xbf16> to vector<32x96xbf16>
    %cst_17 = arith.constant dense<0.000000e+00> : vector<16x96xf32>
    %54 = tpu.matmul %51, %53, %cst_17 {dimension_numbers = #tpu.dot_dimension_numbers<[1], [0], [0], [1], [0, 0, 1, 1], [], []>} : vector<16x32xbf16>, vector<32x96xbf16>, vector<16x96xf32> -> vector<16x96xf32>
    %55 = vector.extract_strided_slice %54 {offsets = [0, 0], sizes = [16, 32], strides = [1, 1]} : vector<16x96xf32> to vector<16x32xf32>
    %c1_i32_18 = arith.constant 1 : i32
    %56 = tpu.dynamic_rotate %55 by %c1_i32_18 dim 0 : vector<16x32xf32>, i32 -> vector<16x32xf32>
    %57 = vector.broadcast %20 : vector<16x1xf32> to vector<16x32xf32>
    %58 = arith.mulf %57, %56 : vector<16x32xf32>
    %59 = vector.extract_strided_slice %54 {offsets = [0, 32], sizes = [16, 32], strides = [1, 1]} : vector<16x96xf32> to vector<16x32xf32>
    %60 = arith.addf %58, %59 : vector<16x32xf32>
    %61 = vector.extract_strided_slice %54 {offsets = [0, 64], sizes = [16, 32], strides = [1, 1]} : vector<16x96xf32> to vector<16x32xf32>
    %c15_i32_19 = arith.constant 15 : i32
    %62 = tpu.dynamic_rotate %61 by %c15_i32_19 dim 0 : vector<16x32xf32>, i32 -> vector<16x32xf32>
    %63 = vector.broadcast %24 : vector<16x1xf32> to vector<16x32xf32>
    %64 = arith.mulf %63, %62 : vector<16x32xf32>
    %65 = arith.addf %60, %64 : vector<16x32xf32>
    %c1_20 = arith.constant 1 : index
    %c0_21 = arith.constant 0 : index
    %c0_22 = arith.constant 0 : index
    %66 = vector.load %arg4[%c1_20, %c0_21, %c0_22] : memref<14x1x64xf32, #tpu.memory_space<vmem>>, vector<1x1x64xf32>
    %67 = vector.shape_cast %66 : vector<1x1x64xf32> to vector<1x64xf32>
    %68 = vector.extract_strided_slice %67 {offsets = [0, 0], sizes = [1, 32], strides = [1, 1]} : vector<1x64xf32> to vector<1x32xf32>
    %69 = vector.broadcast %68 : vector<1x32xf32> to vector<16x32xf32>
    %70 = arith.addf %65, %69 : vector<16x32xf32>
    %cst_23 = arith.constant 0.000000e+00 : f32
    %71 = vector.broadcast %cst_23 : f32 to vector<16x32xf32>
    %72 = arith.cmpf oge, %70, %71 : vector<16x32xf32>
    %cst_24 = arith.constant 2.000000e-01 : f32
    %73 = vector.broadcast %cst_24 : f32 to vector<16x32xf32>
    %74 = arith.mulf %73, %70 : vector<16x32xf32>
    %75 = arith.select %72, %70, %74 : vector<16x32xi1>, vector<16x32xf32>
    %76 = arith.truncf %75 : vector<16x32xf32> to vector<16x32xbf16>
    %c2 = arith.constant 2 : index
    %c0_25 = arith.constant 0 : index
    %c0_26 = arith.constant 0 : index
    %77 = vector.load %arg3[%c2, %c0_25, %c0_26] : memref<14x32x96xbf16, #tpu.memory_space<vmem>>, vector<1x32x96xbf16>
    %78 = vector.shape_cast %77 : vector<1x32x96xbf16> to vector<32x96xbf16>
    %cst_27 = arith.constant dense<0.000000e+00> : vector<16x96xf32>
    %79 = tpu.matmul %76, %78, %cst_27 {dimension_numbers = #tpu.dot_dimension_numbers<[1], [0], [0], [1], [0, 0, 1, 1], [], []>} : vector<16x32xbf16>, vector<32x96xbf16>, vector<16x96xf32> -> vector<16x96xf32>
    %80 = vector.extract_strided_slice %79 {offsets = [0, 0], sizes = [16, 32], strides = [1, 1]} : vector<16x96xf32> to vector<16x32xf32>
    %c1_i32_28 = arith.constant 1 : i32
    %81 = tpu.dynamic_rotate %80 by %c1_i32_28 dim 0 : vector<16x32xf32>, i32 -> vector<16x32xf32>
    %82 = vector.broadcast %20 : vector<16x1xf32> to vector<16x32xf32>
    %83 = arith.mulf %82, %81 : vector<16x32xf32>
    %84 = vector.extract_strided_slice %79 {offsets = [0, 32], sizes = [16, 32], strides = [1, 1]} : vector<16x96xf32> to vector<16x32xf32>
    %85 = arith.addf %83, %84 : vector<16x32xf32>
    %86 = vector.extract_strided_slice %79 {offsets = [0, 64], sizes = [16, 32], strides = [1, 1]} : vector<16x96xf32> to vector<16x32xf32>
    %c15_i32_29 = arith.constant 15 : i32
    %87 = tpu.dynamic_rotate %86 by %c15_i32_29 dim 0 : vector<16x32xf32>, i32 -> vector<16x32xf32>
    %88 = vector.broadcast %24 : vector<16x1xf32> to vector<16x32xf32>
    %89 = arith.mulf %88, %87 : vector<16x32xf32>
    %90 = arith.addf %85, %89 : vector<16x32xf32>
    %c2_30 = arith.constant 2 : index
    %c0_31 = arith.constant 0 : index
    %c0_32 = arith.constant 0 : index
    %91 = vector.load %arg4[%c2_30, %c0_31, %c0_32] : memref<14x1x64xf32, #tpu.memory_space<vmem>>, vector<1x1x64xf32>
    %92 = vector.shape_cast %91 : vector<1x1x64xf32> to vector<1x64xf32>
    %93 = vector.extract_strided_slice %92 {offsets = [0, 0], sizes = [1, 32], strides = [1, 1]} : vector<1x64xf32> to vector<1x32xf32>
    %94 = vector.broadcast %93 : vector<1x32xf32> to vector<16x32xf32>
    %95 = arith.addf %90, %94 : vector<16x32xf32>
    %96 = arith.addf %50, %95 : vector<16x32xf32>
    %97 = arith.truncf %96 : vector<16x32xf32> to vector<16x32xbf16>
    %c3 = arith.constant 3 : index
    %c0_33 = arith.constant 0 : index
    %c0_34 = arith.constant 0 : index
    %98 = vector.load %arg3[%c3, %c0_33, %c0_34] : memref<14x32x96xbf16, #tpu.memory_space<vmem>>, vector<1x32x96xbf16>
    %99 = vector.shape_cast %98 : vector<1x32x96xbf16> to vector<32x96xbf16>
    %cst_35 = arith.constant dense<0.000000e+00> : vector<16x96xf32>
    %100 = tpu.matmul %97, %99, %cst_35 {dimension_numbers = #tpu.dot_dimension_numbers<[1], [0], [0], [1], [0, 0, 1, 1], [], []>} : vector<16x32xbf16>, vector<32x96xbf16>, vector<16x96xf32> -> vector<16x96xf32>
    %101 = vector.extract_strided_slice %100 {offsets = [0, 0], sizes = [16, 32], strides = [1, 1]} : vector<16x96xf32> to vector<16x32xf32>
    %c1_i32_36 = arith.constant 1 : i32
    %102 = tpu.dynamic_rotate %101 by %c1_i32_36 dim 0 : vector<16x32xf32>, i32 -> vector<16x32xf32>
    %103 = vector.broadcast %20 : vector<16x1xf32> to vector<16x32xf32>
    %104 = arith.mulf %103, %102 : vector<16x32xf32>
    %105 = vector.extract_strided_slice %100 {offsets = [0, 32], sizes = [16, 32], strides = [1, 1]} : vector<16x96xf32> to vector<16x32xf32>
    %106 = arith.addf %104, %105 : vector<16x32xf32>
    %107 = vector.extract_strided_slice %100 {offsets = [0, 64], sizes = [16, 32], strides = [1, 1]} : vector<16x96xf32> to vector<16x32xf32>
    %c15_i32_37 = arith.constant 15 : i32
    %108 = tpu.dynamic_rotate %107 by %c15_i32_37 dim 0 : vector<16x32xf32>, i32 -> vector<16x32xf32>
    %109 = vector.broadcast %24 : vector<16x1xf32> to vector<16x32xf32>
    %110 = arith.mulf %109, %108 : vector<16x32xf32>
    %111 = arith.addf %106, %110 : vector<16x32xf32>
    %c3_38 = arith.constant 3 : index
    %c0_39 = arith.constant 0 : index
    %c0_40 = arith.constant 0 : index
    %112 = vector.load %arg4[%c3_38, %c0_39, %c0_40] : memref<14x1x64xf32, #tpu.memory_space<vmem>>, vector<1x1x64xf32>
    %113 = vector.shape_cast %112 : vector<1x1x64xf32> to vector<1x64xf32>
    %114 = vector.extract_strided_slice %113 {offsets = [0, 0], sizes = [1, 32], strides = [1, 1]} : vector<1x64xf32> to vector<1x32xf32>
    %115 = vector.broadcast %114 : vector<1x32xf32> to vector<16x32xf32>
    %116 = arith.addf %111, %115 : vector<16x32xf32>
    %cst_41 = arith.constant 0.000000e+00 : f32
    %117 = vector.broadcast %cst_41 : f32 to vector<16x32xf32>
    %118 = arith.cmpf oge, %116, %117 : vector<16x32xf32>
    %cst_42 = arith.constant 2.000000e-01 : f32
    %119 = vector.broadcast %cst_42 : f32 to vector<16x32xf32>
    %120 = arith.mulf %119, %116 : vector<16x32xf32>
    %121 = arith.select %118, %116, %120 : vector<16x32xi1>, vector<16x32xf32>
    %122 = arith.truncf %121 : vector<16x32xf32> to vector<16x32xbf16>
    %c4 = arith.constant 4 : index
    %c0_43 = arith.constant 0 : index
    %c0_44 = arith.constant 0 : index
    %123 = vector.load %arg3[%c4, %c0_43, %c0_44] : memref<14x32x96xbf16, #tpu.memory_space<vmem>>, vector<1x32x96xbf16>
    %124 = vector.shape_cast %123 : vector<1x32x96xbf16> to vector<32x96xbf16>
    %cst_45 = arith.constant dense<0.000000e+00> : vector<16x96xf32>
    %125 = tpu.matmul %122, %124, %cst_45 {dimension_numbers = #tpu.dot_dimension_numbers<[1], [0], [0], [1], [0, 0, 1, 1], [], []>} : vector<16x32xbf16>, vector<32x96xbf16>, vector<16x96xf32> -> vector<16x96xf32>
    %126 = vector.extract_strided_slice %125 {offsets = [0, 0], sizes = [16, 32], strides = [1, 1]} : vector<16x96xf32> to vector<16x32xf32>
    %c1_i32_46 = arith.constant 1 : i32
    %127 = tpu.dynamic_rotate %126 by %c1_i32_46 dim 0 : vector<16x32xf32>, i32 -> vector<16x32xf32>
    %128 = vector.broadcast %20 : vector<16x1xf32> to vector<16x32xf32>
    %129 = arith.mulf %128, %127 : vector<16x32xf32>
    %130 = vector.extract_strided_slice %125 {offsets = [0, 32], sizes = [16, 32], strides = [1, 1]} : vector<16x96xf32> to vector<16x32xf32>
    %131 = arith.addf %129, %130 : vector<16x32xf32>
    %132 = vector.extract_strided_slice %125 {offsets = [0, 64], sizes = [16, 32], strides = [1, 1]} : vector<16x96xf32> to vector<16x32xf32>
    %c15_i32_47 = arith.constant 15 : i32
    %133 = tpu.dynamic_rotate %132 by %c15_i32_47 dim 0 : vector<16x32xf32>, i32 -> vector<16x32xf32>
    %134 = vector.broadcast %24 : vector<16x1xf32> to vector<16x32xf32>
    %135 = arith.mulf %134, %133 : vector<16x32xf32>
    %136 = arith.addf %131, %135 : vector<16x32xf32>
    %c4_48 = arith.constant 4 : index
    %c0_49 = arith.constant 0 : index
    %c0_50 = arith.constant 0 : index
    %137 = vector.load %arg4[%c4_48, %c0_49, %c0_50] : memref<14x1x64xf32, #tpu.memory_space<vmem>>, vector<1x1x64xf32>
    %138 = vector.shape_cast %137 : vector<1x1x64xf32> to vector<1x64xf32>
    %139 = vector.extract_strided_slice %138 {offsets = [0, 0], sizes = [1, 32], strides = [1, 1]} : vector<1x64xf32> to vector<1x32xf32>
    %140 = vector.broadcast %139 : vector<1x32xf32> to vector<16x32xf32>
    %141 = arith.addf %136, %140 : vector<16x32xf32>
    %cst_51 = arith.constant 0.000000e+00 : f32
    %142 = vector.broadcast %cst_51 : f32 to vector<16x32xf32>
    %143 = arith.cmpf oge, %141, %142 : vector<16x32xf32>
    %cst_52 = arith.constant 2.000000e-01 : f32
    %144 = vector.broadcast %cst_52 : f32 to vector<16x32xf32>
    %145 = arith.mulf %144, %141 : vector<16x32xf32>
    %146 = arith.select %143, %141, %145 : vector<16x32xi1>, vector<16x32xf32>
    %147 = arith.truncf %146 : vector<16x32xf32> to vector<16x32xbf16>
    %c5 = arith.constant 5 : index
    %c0_53 = arith.constant 0 : index
    %c0_54 = arith.constant 0 : index
    %148 = vector.load %arg3[%c5, %c0_53, %c0_54] : memref<14x32x96xbf16, #tpu.memory_space<vmem>>, vector<1x32x96xbf16>
    %149 = vector.shape_cast %148 : vector<1x32x96xbf16> to vector<32x96xbf16>
    %cst_55 = arith.constant dense<0.000000e+00> : vector<16x96xf32>
    %150 = tpu.matmul %147, %149, %cst_55 {dimension_numbers = #tpu.dot_dimension_numbers<[1], [0], [0], [1], [0, 0, 1, 1], [], []>} : vector<16x32xbf16>, vector<32x96xbf16>, vector<16x96xf32> -> vector<16x96xf32>
    %151 = vector.extract_strided_slice %150 {offsets = [0, 0], sizes = [16, 32], strides = [1, 1]} : vector<16x96xf32> to vector<16x32xf32>
    %c1_i32_56 = arith.constant 1 : i32
    %152 = tpu.dynamic_rotate %151 by %c1_i32_56 dim 0 : vector<16x32xf32>, i32 -> vector<16x32xf32>
    %153 = vector.broadcast %20 : vector<16x1xf32> to vector<16x32xf32>
    %154 = arith.mulf %153, %152 : vector<16x32xf32>
    %155 = vector.extract_strided_slice %150 {offsets = [0, 32], sizes = [16, 32], strides = [1, 1]} : vector<16x96xf32> to vector<16x32xf32>
    %156 = arith.addf %154, %155 : vector<16x32xf32>
    %157 = vector.extract_strided_slice %150 {offsets = [0, 64], sizes = [16, 32], strides = [1, 1]} : vector<16x96xf32> to vector<16x32xf32>
    %c15_i32_57 = arith.constant 15 : i32
    %158 = tpu.dynamic_rotate %157 by %c15_i32_57 dim 0 : vector<16x32xf32>, i32 -> vector<16x32xf32>
    %159 = vector.broadcast %24 : vector<16x1xf32> to vector<16x32xf32>
    %160 = arith.mulf %159, %158 : vector<16x32xf32>
    %161 = arith.addf %156, %160 : vector<16x32xf32>
    %c5_58 = arith.constant 5 : index
    %c0_59 = arith.constant 0 : index
    %c0_60 = arith.constant 0 : index
    %162 = vector.load %arg4[%c5_58, %c0_59, %c0_60] : memref<14x1x64xf32, #tpu.memory_space<vmem>>, vector<1x1x64xf32>
    %163 = vector.shape_cast %162 : vector<1x1x64xf32> to vector<1x64xf32>
    %164 = vector.extract_strided_slice %163 {offsets = [0, 0], sizes = [1, 32], strides = [1, 1]} : vector<1x64xf32> to vector<1x32xf32>
    %165 = vector.broadcast %164 : vector<1x32xf32> to vector<16x32xf32>
    %166 = arith.addf %161, %165 : vector<16x32xf32>
    %167 = arith.addf %121, %166 : vector<16x32xf32>
    %168 = arith.truncf %167 : vector<16x32xf32> to vector<16x32xbf16>
    %c6 = arith.constant 6 : index
    %c0_61 = arith.constant 0 : index
    %c0_62 = arith.constant 0 : index
    %169 = vector.load %arg3[%c6, %c0_61, %c0_62] : memref<14x32x96xbf16, #tpu.memory_space<vmem>>, vector<1x32x96xbf16>
    %170 = vector.shape_cast %169 : vector<1x32x96xbf16> to vector<32x96xbf16>
    %cst_63 = arith.constant dense<0.000000e+00> : vector<16x96xf32>
    %171 = tpu.matmul %168, %170, %cst_63 {dimension_numbers = #tpu.dot_dimension_numbers<[1], [0], [0], [1], [0, 0, 1, 1], [], []>} : vector<16x32xbf16>, vector<32x96xbf16>, vector<16x96xf32> -> vector<16x96xf32>
    %c6_64 = arith.constant 6 : index
    %c0_65 = arith.constant 0 : index
    %c0_66 = arith.constant 0 : index
    %172 = vector.load %arg4[%c6_64, %c0_65, %c0_66] : memref<14x1x64xf32, #tpu.memory_space<vmem>>, vector<1x1x64xf32>
    %173 = vector.shape_cast %172 : vector<1x1x64xf32> to vector<1x64xf32>
    %174 = vector.extract_strided_slice %171 {offsets = [0, 0], sizes = [16, 32], strides = [1, 1]} : vector<16x96xf32> to vector<16x32xf32>
    %175 = vector.extract_strided_slice %173 {offsets = [0, 0], sizes = [1, 32], strides = [1, 1]} : vector<1x64xf32> to vector<1x32xf32>
    %176 = vector.broadcast %175 : vector<1x32xf32> to vector<16x32xf32>
    %177 = arith.addf %174, %176 : vector<16x32xf32>
    %178 = vector.extract_strided_slice %171 {offsets = [0, 32], sizes = [16, 32], strides = [1, 1]} : vector<16x96xf32> to vector<16x32xf32>
    %179 = vector.extract_strided_slice %173 {offsets = [0, 32], sizes = [1, 32], strides = [1, 1]} : vector<1x64xf32> to vector<1x32xf32>
    %180 = vector.broadcast %179 : vector<1x32xf32> to vector<16x32xf32>
    %181 = arith.addf %178, %180 : vector<16x32xf32>
    %c0_67 = arith.constant 0 : index
    %c0_68 = arith.constant 0 : index
    %182 = vector.load %arg2[%c0_67, %c0_68] : memref<16x32xf32, #tpu.memory_space<vmem>>, vector<16x32xf32>
    %cst_69 = arith.constant 5.000000e-01 : f32
    %183 = vector.broadcast %cst_69 : f32 to vector<16x32xf32>
    %184 = arith.mulf %183, %181 : vector<16x32xf32>
    %185 = math.exp %184 : vector<16x32xf32>
    %186 = arith.mulf %182, %185 : vector<16x32xf32>
    %187 = arith.addf %177, %186 : vector<16x32xf32>
    %c0_70 = arith.constant 0 : index
    %c0_71 = arith.constant 0 : index
    %188 = vector.load %arg6[%c0_70, %c0_71] : memref<16x96xf32, #tpu.memory_space<vmem>>, vector<16x32xf32>
    tpu.vector_store %arg6[%c0_70, %c0_71], %187 {strides = array<i32>} : memref<16x96xf32, #tpu.memory_space<vmem>>, vector<16x32xf32>,
    %c0_72 = arith.constant 0 : index
    %c32 = arith.constant 32 : index
    %189 = vector.load %arg6[%c0_72, %c32] : memref<16x96xf32, #tpu.memory_space<vmem>>, vector<16x32xf32>
    tpu.vector_store %arg6[%c0_72, %c32], %177 {strides = array<i32>} : memref<16x96xf32, #tpu.memory_space<vmem>>, vector<16x32xf32>,
    %c0_73 = arith.constant 0 : index
    %c64 = arith.constant 64 : index
    %190 = vector.load %arg6[%c0_73, %c64] : memref<16x96xf32, #tpu.memory_space<vmem>>, vector<16x32xf32>
    tpu.vector_store %arg6[%c0_73, %c64], %181 {strides = array<i32>} : memref<16x96xf32, #tpu.memory_space<vmem>>, vector<16x32xf32>,
    %191 = arith.truncf %187 : vector<16x32xf32> to vector<16x32xbf16>
    %c7 = arith.constant 7 : index
    %c0_74 = arith.constant 0 : index
    %c0_75 = arith.constant 0 : index
    %192 = vector.load %arg3[%c7, %c0_74, %c0_75] : memref<14x32x96xbf16, #tpu.memory_space<vmem>>, vector<1x32x96xbf16>
    %193 = vector.shape_cast %192 : vector<1x32x96xbf16> to vector<32x96xbf16>
    %cst_76 = arith.constant dense<0.000000e+00> : vector<16x96xf32>
    %194 = tpu.matmul %191, %193, %cst_76 {dimension_numbers = #tpu.dot_dimension_numbers<[1], [0], [0], [1], [0, 0, 1, 1], [], []>} : vector<16x32xbf16>, vector<32x96xbf16>, vector<16x96xf32> -> vector<16x96xf32>
    %195 = vector.extract_strided_slice %194 {offsets = [0, 0], sizes = [16, 32], strides = [1, 1]} : vector<16x96xf32> to vector<16x32xf32>
    %c1_i32_77 = arith.constant 1 : i32
    %196 = tpu.dynamic_rotate %195 by %c1_i32_77 dim 0 : vector<16x32xf32>, i32 -> vector<16x32xf32>
    %197 = vector.broadcast %20 : vector<16x1xf32> to vector<16x32xf32>
    %198 = arith.mulf %197, %196 : vector<16x32xf32>
    %199 = vector.extract_strided_slice %194 {offsets = [0, 32], sizes = [16, 32], strides = [1, 1]} : vector<16x96xf32> to vector<16x32xf32>
    %200 = arith.addf %198, %199 : vector<16x32xf32>
    %201 = vector.extract_strided_slice %194 {offsets = [0, 64], sizes = [16, 32], strides = [1, 1]} : vector<16x96xf32> to vector<16x32xf32>
    %c15_i32_78 = arith.constant 15 : i32
    %202 = tpu.dynamic_rotate %201 by %c15_i32_78 dim 0 : vector<16x32xf32>, i32 -> vector<16x32xf32>
    %203 = vector.broadcast %24 : vector<16x1xf32> to vector<16x32xf32>
    %204 = arith.mulf %203, %202 : vector<16x32xf32>
    %205 = arith.addf %200, %204 : vector<16x32xf32>
    %c7_79 = arith.constant 7 : index
    %c0_80 = arith.constant 0 : index
    %c0_81 = arith.constant 0 : index
    %206 = vector.load %arg4[%c7_79, %c0_80, %c0_81] : memref<14x1x64xf32, #tpu.memory_space<vmem>>, vector<1x1x64xf32>
    %207 = vector.shape_cast %206 : vector<1x1x64xf32> to vector<1x64xf32>
    %208 = vector.extract_strided_slice %207 {offsets = [0, 0], sizes = [1, 32], strides = [1, 1]} : vector<1x64xf32> to vector<1x32xf32>
    %209 = vector.broadcast %208 : vector<1x32xf32> to vector<16x32xf32>
    %210 = arith.addf %205, %209 : vector<16x32xf32>
    %cst_82 = arith.constant 0.000000e+00 : f32
    %211 = vector.broadcast %cst_82 : f32 to vector<16x32xf32>
    %212 = arith.cmpf oge, %210, %211 : vector<16x32xf32>
    %cst_83 = arith.constant 2.000000e-01 : f32
    %213 = vector.broadcast %cst_83 : f32 to vector<16x32xf32>
    %214 = arith.mulf %213, %210 : vector<16x32xf32>
    %215 = arith.select %212, %210, %214 : vector<16x32xi1>, vector<16x32xf32>
    %216 = arith.truncf %215 : vector<16x32xf32> to vector<16x32xbf16>
    %c8 = arith.constant 8 : index
    %c0_84 = arith.constant 0 : index
    %c0_85 = arith.constant 0 : index
    %217 = vector.load %arg3[%c8, %c0_84, %c0_85] : memref<14x32x96xbf16, #tpu.memory_space<vmem>>, vector<1x32x96xbf16>
    %218 = vector.shape_cast %217 : vector<1x32x96xbf16> to vector<32x96xbf16>
    %cst_86 = arith.constant dense<0.000000e+00> : vector<16x96xf32>
    %219 = tpu.matmul %216, %218, %cst_86 {dimension_numbers = #tpu.dot_dimension_numbers<[1], [0], [0], [1], [0, 0, 1, 1], [], []>} : vector<16x32xbf16>, vector<32x96xbf16>, vector<16x96xf32> -> vector<16x96xf32>
    %220 = vector.extract_strided_slice %219 {offsets = [0, 0], sizes = [16, 32], strides = [1, 1]} : vector<16x96xf32> to vector<16x32xf32>
    %c1_i32_87 = arith.constant 1 : i32
    %221 = tpu.dynamic_rotate %220 by %c1_i32_87 dim 0 : vector<16x32xf32>, i32 -> vector<16x32xf32>
    %222 = vector.broadcast %20 : vector<16x1xf32> to vector<16x32xf32>
    %223 = arith.mulf %222, %221 : vector<16x32xf32>
    %224 = vector.extract_strided_slice %219 {offsets = [0, 32], sizes = [16, 32], strides = [1, 1]} : vector<16x96xf32> to vector<16x32xf32>
    %225 = arith.addf %223, %224 : vector<16x32xf32>
    %226 = vector.extract_strided_slice %219 {offsets = [0, 64], sizes = [16, 32], strides = [1, 1]} : vector<16x96xf32> to vector<16x32xf32>
    %c15_i32_88 = arith.constant 15 : i32
    %227 = tpu.dynamic_rotate %226 by %c15_i32_88 dim 0 : vector<16x32xf32>, i32 -> vector<16x32xf32>
    %228 = vector.broadcast %24 : vector<16x1xf32> to vector<16x32xf32>
    %229 = arith.mulf %228, %227 : vector<16x32xf32>
    %230 = arith.addf %225, %229 : vector<16x32xf32>
    %c8_89 = arith.constant 8 : index
    %c0_90 = arith.constant 0 : index
    %c0_91 = arith.constant 0 : index
    %231 = vector.load %arg4[%c8_89, %c0_90, %c0_91] : memref<14x1x64xf32, #tpu.memory_space<vmem>>, vector<1x1x64xf32>
    %232 = vector.shape_cast %231 : vector<1x1x64xf32> to vector<1x64xf32>
    %233 = vector.extract_strided_slice %232 {offsets = [0, 0], sizes = [1, 32], strides = [1, 1]} : vector<1x64xf32> to vector<1x32xf32>
    %234 = vector.broadcast %233 : vector<1x32xf32> to vector<16x32xf32>
    %235 = arith.addf %230, %234 : vector<16x32xf32>
    %236 = arith.addf %187, %235 : vector<16x32xf32>
    %237 = arith.truncf %236 : vector<16x32xf32> to vector<16x32xbf16>
    %c9 = arith.constant 9 : index
    %c0_92 = arith.constant 0 : index
    %c0_93 = arith.constant 0 : index
    %238 = vector.load %arg3[%c9, %c0_92, %c0_93] : memref<14x32x96xbf16, #tpu.memory_space<vmem>>, vector<1x32x96xbf16>
    %239 = vector.shape_cast %238 : vector<1x32x96xbf16> to vector<32x96xbf16>
    %cst_94 = arith.constant dense<0.000000e+00> : vector<16x96xf32>
    %240 = tpu.matmul %237, %239, %cst_94 {dimension_numbers = #tpu.dot_dimension_numbers<[1], [0], [0], [1], [0, 0, 1, 1], [], []>} : vector<16x32xbf16>, vector<32x96xbf16>, vector<16x96xf32> -> vector<16x96xf32>
    %241 = vector.extract_strided_slice %240 {offsets = [0, 0], sizes = [16, 32], strides = [1, 1]} : vector<16x96xf32> to vector<16x32xf32>
    %c1_i32_95 = arith.constant 1 : i32
    %242 = tpu.dynamic_rotate %241 by %c1_i32_95 dim 0 : vector<16x32xf32>, i32 -> vector<16x32xf32>
    %243 = vector.broadcast %20 : vector<16x1xf32> to vector<16x32xf32>
    %244 = arith.mulf %243, %242 : vector<16x32xf32>
    %245 = vector.extract_strided_slice %240 {offsets = [0, 32], sizes = [16, 32], strides = [1, 1]} : vector<16x96xf32> to vector<16x32xf32>
    %246 = arith.addf %244, %245 : vector<16x32xf32>
    %247 = vector.extract_strided_slice %240 {offsets = [0, 64], sizes = [16, 32], strides = [1, 1]} : vector<16x96xf32> to vector<16x32xf32>
    %c15_i32_96 = arith.constant 15 : i32
    %248 = tpu.dynamic_rotate %247 by %c15_i32_96 dim 0 : vector<16x32xf32>, i32 -> vector<16x32xf32>
    %249 = vector.broadcast %24 : vector<16x1xf32> to vector<16x32xf32>
    %250 = arith.mulf %249, %248 : vector<16x32xf32>
    %251 = arith.addf %246, %250 : vector<16x32xf32>
    %c9_97 = arith.constant 9 : index
    %c0_98 = arith.constant 0 : index
    %c0_99 = arith.constant 0 : index
    %252 = vector.load %arg4[%c9_97, %c0_98, %c0_99] : memref<14x1x64xf32, #tpu.memory_space<vmem>>, vector<1x1x64xf32>
    %253 = vector.shape_cast %252 : vector<1x1x64xf32> to vector<1x64xf32>
    %254 = vector.extract_strided_slice %253 {offsets = [0, 0], sizes = [1, 32], strides = [1, 1]} : vector<1x64xf32> to vector<1x32xf32>
    %255 = vector.broadcast %254 : vector<1x32xf32> to vector<16x32xf32>
    %256 = arith.addf %251, %255 : vector<16x32xf32>
    %cst_100 = arith.constant 0.000000e+00 : f32
    %257 = vector.broadcast %cst_100 : f32 to vector<16x32xf32>
    %258 = arith.cmpf oge, %256, %257 : vector<16x32xf32>
    %cst_101 = arith.constant 2.000000e-01 : f32
    %259 = vector.broadcast %cst_101 : f32 to vector<16x32xf32>
    %260 = arith.mulf %259, %256 : vector<16x32xf32>
    %261 = arith.select %258, %256, %260 : vector<16x32xi1>, vector<16x32xf32>
    %262 = arith.truncf %261 : vector<16x32xf32> to vector<16x32xbf16>
    %c10 = arith.constant 10 : index
    %c0_102 = arith.constant 0 : index
    %c0_103 = arith.constant 0 : index
    %263 = vector.load %arg3[%c10, %c0_102, %c0_103] : memref<14x32x96xbf16, #tpu.memory_space<vmem>>, vector<1x32x96xbf16>
    %264 = vector.shape_cast %263 : vector<1x32x96xbf16> to vector<32x96xbf16>
    %cst_104 = arith.constant dense<0.000000e+00> : vector<16x96xf32>
    %265 = tpu.matmul %262, %264, %cst_104 {dimension_numbers = #tpu.dot_dimension_numbers<[1], [0], [0], [1], [0, 0, 1, 1], [], []>} : vector<16x32xbf16>, vector<32x96xbf16>, vector<16x96xf32> -> vector<16x96xf32>
    %266 = vector.extract_strided_slice %265 {offsets = [0, 0], sizes = [16, 32], strides = [1, 1]} : vector<16x96xf32> to vector<16x32xf32>
    %c1_i32_105 = arith.constant 1 : i32
    %267 = tpu.dynamic_rotate %266 by %c1_i32_105 dim 0 : vector<16x32xf32>, i32 -> vector<16x32xf32>
    %268 = vector.broadcast %20 : vector<16x1xf32> to vector<16x32xf32>
    %269 = arith.mulf %268, %267 : vector<16x32xf32>
    %270 = vector.extract_strided_slice %265 {offsets = [0, 32], sizes = [16, 32], strides = [1, 1]} : vector<16x96xf32> to vector<16x32xf32>
    %271 = arith.addf %269, %270 : vector<16x32xf32>
    %272 = vector.extract_strided_slice %265 {offsets = [0, 64], sizes = [16, 32], strides = [1, 1]} : vector<16x96xf32> to vector<16x32xf32>
    %c15_i32_106 = arith.constant 15 : i32
    %273 = tpu.dynamic_rotate %272 by %c15_i32_106 dim 0 : vector<16x32xf32>, i32 -> vector<16x32xf32>
    %274 = vector.broadcast %24 : vector<16x1xf32> to vector<16x32xf32>
    %275 = arith.mulf %274, %273 : vector<16x32xf32>
    %276 = arith.addf %271, %275 : vector<16x32xf32>
    %c10_107 = arith.constant 10 : index
    %c0_108 = arith.constant 0 : index
    %c0_109 = arith.constant 0 : index
    %277 = vector.load %arg4[%c10_107, %c0_108, %c0_109] : memref<14x1x64xf32, #tpu.memory_space<vmem>>, vector<1x1x64xf32>
    %278 = vector.shape_cast %277 : vector<1x1x64xf32> to vector<1x64xf32>
    %279 = vector.extract_strided_slice %278 {offsets = [0, 0], sizes = [1, 32], strides = [1, 1]} : vector<1x64xf32> to vector<1x32xf32>
    %280 = vector.broadcast %279 : vector<1x32xf32> to vector<16x32xf32>
    %281 = arith.addf %276, %280 : vector<16x32xf32>
    %282 = arith.addf %236, %281 : vector<16x32xf32>
    %283 = arith.truncf %282 : vector<16x32xf32> to vector<16x32xbf16>
    %c11 = arith.constant 11 : index
    %c0_110 = arith.constant 0 : index
    %c0_111 = arith.constant 0 : index
    %284 = vector.load %arg3[%c11, %c0_110, %c0_111] : memref<14x32x96xbf16, #tpu.memory_space<vmem>>, vector<1x32x96xbf16>
    %285 = vector.shape_cast %284 : vector<1x32x96xbf16> to vector<32x96xbf16>
    %cst_112 = arith.constant dense<0.000000e+00> : vector<16x96xf32>
    %286 = tpu.matmul %283, %285, %cst_112 {dimension_numbers = #tpu.dot_dimension_numbers<[1], [0], [0], [1], [0, 0, 1, 1], [], []>} : vector<16x32xbf16>, vector<32x96xbf16>, vector<16x96xf32> -> vector<16x96xf32>
    %287 = vector.extract_strided_slice %286 {offsets = [0, 0], sizes = [16, 32], strides = [1, 1]} : vector<16x96xf32> to vector<16x32xf32>
    %c1_i32_113 = arith.constant 1 : i32
    %288 = tpu.dynamic_rotate %287 by %c1_i32_113 dim 0 : vector<16x32xf32>, i32 -> vector<16x32xf32>
    %289 = vector.broadcast %20 : vector<16x1xf32> to vector<16x32xf32>
    %290 = arith.mulf %289, %288 : vector<16x32xf32>
    %291 = vector.extract_strided_slice %286 {offsets = [0, 32], sizes = [16, 32], strides = [1, 1]} : vector<16x96xf32> to vector<16x32xf32>
    %292 = arith.addf %290, %291 : vector<16x32xf32>
    %293 = vector.extract_strided_slice %286 {offsets = [0, 64], sizes = [16, 32], strides = [1, 1]} : vector<16x96xf32> to vector<16x32xf32>
    %c15_i32_114 = arith.constant 15 : i32
    %294 = tpu.dynamic_rotate %293 by %c15_i32_114 dim 0 : vector<16x32xf32>, i32 -> vector<16x32xf32>
    %295 = vector.broadcast %24 : vector<16x1xf32> to vector<16x32xf32>
    %296 = arith.mulf %295, %294 : vector<16x32xf32>
    %297 = arith.addf %292, %296 : vector<16x32xf32>
    %c11_115 = arith.constant 11 : index
    %c0_116 = arith.constant 0 : index
    %c0_117 = arith.constant 0 : index
    %298 = vector.load %arg4[%c11_115, %c0_116, %c0_117] : memref<14x1x64xf32, #tpu.memory_space<vmem>>, vector<1x1x64xf32>
    %299 = vector.shape_cast %298 : vector<1x1x64xf32> to vector<1x64xf32>
    %300 = vector.extract_strided_slice %299 {offsets = [0, 0], sizes = [1, 32], strides = [1, 1]} : vector<1x64xf32> to vector<1x32xf32>
    %301 = vector.broadcast %300 : vector<1x32xf32> to vector<16x32xf32>
    %302 = arith.addf %297, %301 : vector<16x32xf32>
    %cst_118 = arith.constant 0.000000e+00 : f32
    %303 = vector.broadcast %cst_118 : f32 to vector<16x32xf32>
    %304 = arith.cmpf oge, %302, %303 : vector<16x32xf32>
    %cst_119 = arith.constant 2.000000e-01 : f32
    %305 = vector.broadcast %cst_119 : f32 to vector<16x32xf32>
    %306 = arith.mulf %305, %302 : vector<16x32xf32>
    %307 = arith.select %304, %302, %306 : vector<16x32xi1>, vector<16x32xf32>
    %308 = arith.truncf %307 : vector<16x32xf32> to vector<16x32xbf16>
    %c12 = arith.constant 12 : index
    %c0_120 = arith.constant 0 : index
    %c0_121 = arith.constant 0 : index
    %309 = vector.load %arg3[%c12, %c0_120, %c0_121] : memref<14x32x96xbf16, #tpu.memory_space<vmem>>, vector<1x32x96xbf16>
    %310 = vector.shape_cast %309 : vector<1x32x96xbf16> to vector<32x96xbf16>
    %cst_122 = arith.constant dense<0.000000e+00> : vector<16x96xf32>
    %311 = tpu.matmul %308, %310, %cst_122 {dimension_numbers = #tpu.dot_dimension_numbers<[1], [0], [0], [1], [0, 0, 1, 1], [], []>} : vector<16x32xbf16>, vector<32x96xbf16>, vector<16x96xf32> -> vector<16x96xf32>
    %312 = vector.extract_strided_slice %311 {offsets = [0, 0], sizes = [16, 32], strides = [1, 1]} : vector<16x96xf32> to vector<16x32xf32>
    %c1_i32_123 = arith.constant 1 : i32
    %313 = tpu.dynamic_rotate %312 by %c1_i32_123 dim 0 : vector<16x32xf32>, i32 -> vector<16x32xf32>
    %314 = vector.broadcast %20 : vector<16x1xf32> to vector<16x32xf32>
    %315 = arith.mulf %314, %313 : vector<16x32xf32>
    %316 = vector.extract_strided_slice %311 {offsets = [0, 32], sizes = [16, 32], strides = [1, 1]} : vector<16x96xf32> to vector<16x32xf32>
    %317 = arith.addf %315, %316 : vector<16x32xf32>
    %318 = vector.extract_strided_slice %311 {offsets = [0, 64], sizes = [16, 32], strides = [1, 1]} : vector<16x96xf32> to vector<16x32xf32>
    %c15_i32_124 = arith.constant 15 : i32
    %319 = tpu.dynamic_rotate %318 by %c15_i32_124 dim 0 : vector<16x32xf32>, i32 -> vector<16x32xf32>
    %320 = vector.broadcast %24 : vector<16x1xf32> to vector<16x32xf32>
    %321 = arith.mulf %320, %319 : vector<16x32xf32>
    %322 = arith.addf %317, %321 : vector<16x32xf32>
    %c12_125 = arith.constant 12 : index
    %c0_126 = arith.constant 0 : index
    %c0_127 = arith.constant 0 : index
    %323 = vector.load %arg4[%c12_125, %c0_126, %c0_127] : memref<14x1x64xf32, #tpu.memory_space<vmem>>, vector<1x1x64xf32>
    %324 = vector.shape_cast %323 : vector<1x1x64xf32> to vector<1x64xf32>
    %325 = vector.extract_strided_slice %324 {offsets = [0, 0], sizes = [1, 32], strides = [1, 1]} : vector<1x64xf32> to vector<1x32xf32>
    %326 = vector.broadcast %325 : vector<1x32xf32> to vector<16x32xf32>
    %327 = arith.addf %322, %326 : vector<16x32xf32>
    %cst_128 = arith.constant 0.000000e+00 : f32
    %328 = vector.broadcast %cst_128 : f32 to vector<16x32xf32>
    %329 = arith.cmpf oge, %327, %328 : vector<16x32xf32>
    %cst_129 = arith.constant 2.000000e-01 : f32
    %330 = vector.broadcast %cst_129 : f32 to vector<16x32xf32>
    %331 = arith.mulf %330, %327 : vector<16x32xf32>
    %332 = arith.select %329, %327, %331 : vector<16x32xi1>, vector<16x32xf32>
    %333 = arith.truncf %332 : vector<16x32xf32> to vector<16x32xbf16>
    %c13 = arith.constant 13 : index
    %c0_130 = arith.constant 0 : index
    %c0_131 = arith.constant 0 : index
    %334 = vector.load %arg3[%c13, %c0_130, %c0_131] : memref<14x32x96xbf16, #tpu.memory_space<vmem>>, vector<1x32x96xbf16>
    %335 = vector.shape_cast %334 : vector<1x32x96xbf16> to vector<32x96xbf16>
    %cst_132 = arith.constant dense<0.000000e+00> : vector<16x96xf32>
    %336 = tpu.matmul %333, %335, %cst_132 {dimension_numbers = #tpu.dot_dimension_numbers<[1], [0], [0], [1], [0, 0, 1, 1], [], []>} : vector<16x32xbf16>, vector<32x96xbf16>, vector<16x96xf32> -> vector<16x96xf32>
    %337 = vector.extract_strided_slice %336 {offsets = [0, 0], sizes = [16, 32], strides = [1, 1]} : vector<16x96xf32> to vector<16x32xf32>
    %c1_i32_133 = arith.constant 1 : i32
    %338 = tpu.dynamic_rotate %337 by %c1_i32_133 dim 0 : vector<16x32xf32>, i32 -> vector<16x32xf32>
    %339 = vector.broadcast %20 : vector<16x1xf32> to vector<16x32xf32>
    %340 = arith.mulf %339, %338 : vector<16x32xf32>
    %341 = vector.extract_strided_slice %336 {offsets = [0, 32], sizes = [16, 32], strides = [1, 1]} : vector<16x96xf32> to vector<16x32xf32>
    %342 = arith.addf %340, %341 : vector<16x32xf32>
    %343 = vector.extract_strided_slice %336 {offsets = [0, 64], sizes = [16, 32], strides = [1, 1]} : vector<16x96xf32> to vector<16x32xf32>
    %c15_i32_134 = arith.constant 15 : i32
    %344 = tpu.dynamic_rotate %343 by %c15_i32_134 dim 0 : vector<16x32xf32>, i32 -> vector<16x32xf32>
    %345 = vector.broadcast %24 : vector<16x1xf32> to vector<16x32xf32>
    %346 = arith.mulf %345, %344 : vector<16x32xf32>
    %347 = arith.addf %342, %346 : vector<16x32xf32>
    %c13_135 = arith.constant 13 : index
    %c0_136 = arith.constant 0 : index
    %c0_137 = arith.constant 0 : index
    %348 = vector.load %arg4[%c13_135, %c0_136, %c0_137] : memref<14x1x64xf32, #tpu.memory_space<vmem>>, vector<1x1x64xf32>
    %349 = vector.shape_cast %348 : vector<1x1x64xf32> to vector<1x64xf32>
    %350 = vector.extract_strided_slice %349 {offsets = [0, 0], sizes = [1, 32], strides = [1, 1]} : vector<1x64xf32> to vector<1x32xf32>
    %351 = vector.broadcast %350 : vector<1x32xf32> to vector<16x32xf32>
    %352 = arith.addf %347, %351 : vector<16x32xf32>
    %353 = vector.extract_strided_slice %352 {offsets = [0, 0], sizes = [16, 12], strides = [1, 1]} : vector<16x32xf32> to vector<16x12xf32>
    %c0_138 = arith.constant 0 : index
    %c0_139 = arith.constant 0 : index
    %354 = vector.load %arg5[%c0_138, %c0_139] : memref<16x12xf32, #tpu.memory_space<vmem>>, vector<16x12xf32>
    tpu.vector_store %arg5[%c0_138, %c0_139], %353 {strides = array<i32>} : memref<16x12xf32, #tpu.memory_space<vmem>>, vector<16x12xf32>,
    return
  }
  func.func @transform_0(%arg0: i32) -> (i32, i32) {
    %c0_i32 = arith.constant 0 : i32
    %c0_i32_0 = arith.constant 0 : i32
    return %arg0, %c0_i32 : i32, i32
  }
  func.func @transform_1(%arg0: i32) -> (i32, i32) {
    %c0_i32 = arith.constant 0 : i32
    %c0_i32_0 = arith.constant 0 : i32
    return %arg0, %c0_i32 : i32, i32
  }
  func.func @transform_2(%arg0: i32) -> (i32, i32, i32) {
    %c0_i32 = arith.constant 0 : i32
    %c0_i32_0 = arith.constant 0 : i32
    %c0_i32_1 = arith.constant 0 : i32
    %c0_i32_2 = arith.constant 0 : i32
    return %c0_i32, %c0_i32_0, %c0_i32_1 : i32, i32, i32
  }
  func.func @transform_3(%arg0: i32) -> (i32, i32, i32) {
    %c0_i32 = arith.constant 0 : i32
    %c0_i32_0 = arith.constant 0 : i32
    %c0_i32_1 = arith.constant 0 : i32
    %c0_i32_2 = arith.constant 0 : i32
    return %c0_i32, %c0_i32_0, %c0_i32_1 : i32, i32, i32
  }
  func.func @transform_4(%arg0: i32) -> (i32, i32) {
    %c0_i32 = arith.constant 0 : i32
    %c0_i32_0 = arith.constant 0 : i32
    return %arg0, %c0_i32 : i32, i32
  }
  func.func @transform_5(%arg0: i32) -> (i32, i32) {
    %c0_i32 = arith.constant 0 : i32
    %c0_i32_0 = arith.constant 0 : i32
    return %arg0, %c0_i32 : i32, i32
  }
}

</mosaic_0001>

<bundles_post_ra>
// kernel: vaeconv_forward.1
= control target key start
LH: loop header
LB: loop body
LE: loop exit
PB: predicated region body
PF: predicated region fallthrough
CT: control target
= control target key end

     0   :  { %11 = vsyncpa [#allocation3], 0  ;;  %s1819_s18 = smov 0   ;;  %s2155_s0 = inlined_call_operand.vmem [shape: f32[32,32], index: 0, kind: input, shape index: {}]   ;;  %s2156_s1 = inlined_call_operand.vmem [shape: f32[32,32], index: 1, kind: input, shape index: {}]   ;;  %s2157_s2 = inlined_call_operand.hbm [shape: bf16[14,32,96], index: 2, kind: input, shape index: {}]   ;;  %s2158_s3 = inlined_call_operand.vmem [shape: f32[14,1,64], index: 3, kind: input, shape index: {}]   ;;  %s2159_s4 = inlined_call_operand.vmem [shape: f32[32,12], index: 4, kind: output, shape index: {0}]   ;;  %s2160_s5 = inlined_call_operand.vmem [shape: f32[32,96], index: 5, kind: output, shape index: {1}]  }
   0x1 LB: > { %s179_s21 = sshll.u32 %s2157_s2, 4  ;;  %s1511_s22 = sadd.s32 4294967295, %s1780_s18   ;;  %s1780_s18 = sphi %s1819_s18, %s17_s18   ;;  %s180_s21 = int_to_ptr.hbm [resolvable:$true] %s179_s21 }
   0x2   : > { %p1513_p0 = scmp.ge.s32.totalorder %s1780_s18, 1  ;;  %p168_p1 = scmp.lt.s32.totalorder %s1780_s18, 3 }
   0x3   : > { %p1705_p2 = scmp.eq.s32.totalorder %s1511_s22, 0  ;;  %s1782_s23 = smov [#allocation2]  }
   0x4   : > { %p169_p3 = pnand %p1513_p0, %p168_p1  ;;  %s181_s24 = sshll.u32 %s1782_s23, 4  ;;  %s182_s24 = int_to_ptr.vmem [resolvable:$true] %s181_s24 }
   0x5   : > { %s1783_s25 = smov 64   ;;  %s1784_s26 = smov 4  }
   0x6   : > { %p1701_p4 = pneg %p169_p3  ;;  %218 = sbr.rel (%p169_p3) target bundleno = 3726 (0xe8e), region = 36 }
   0x8   : > { %p1702_p5 = pnand %p1705_p2, %p1701_p4 }
   0xa   : > { %1704 = dma.hbm_to_vmem [thread:$0]  (!%p1702_p5), %s180_s21, 3584, %s182_s24, [#allocation3], %s1783_s25, %s1783_s25, %s1784_s26  }
   0xb   : > { %1775 = dma.done.wait (%p1705_p2), [#allocation3], 3584  }
   0xc   : > { %1777 = vsyncadd (%p1705_p2), [#allocation3], 4294963712  ;;  %s1518_s27 = sshll.u32 %s1511_s22, 1  ;;  %v1670_v0 = vld [vmem:[#allocation2 + $0x8] sm:$0xff]  ;;  %v1669_v1 = vld [vmem:[#allocation2] sm:$0xff]  ;;  %vm340_vm0 = vcmask 261120   ;;  %v282_v9 = vlaneseq }
   0xd   : > { %p258_p6 = scmp.lt.s32.totalorder %s1518_s27, 3  ;;  %350 = vmatpush.bf16.msra.mxu0 %v1670_v0  ;;  %s1785_s7 = smov 96   ;;  %v1672_v7 = vld [vmem:[#allocation2 + $0x18] sm:$0xff]  ;;  %v1671_v8 = vld [vmem:[#allocation2 + $0x10] sm:$0xff]  ;;  %v1787_v18 = vmov 0.0   ;;  %v1674_v45 = vld [vmem:[#allocation2 + $0x28] sm:$0xff] }
   0xe   : > { %s1786_s8 = smov 64   ;;  %429 = vmatpush.bf16.msra.mxu1 %v1672_v7  ;;  %v1841_v10 = vshrl.u32 %v282_v9, 7  ;;  %v1722_v28 = vld [vmem:[%s2158_s3] ss:$0 sm:$0xff]  ;;  %507 = vmatpush.bf16.msra.mxu2 %v1674_v45  ;;  %v1723_v58 = vld [vmem:[%s2158_s3 + $0x1] ss:$0 sm:$0xff] }
   0xf   : > { %s2162_s27 = smov (!%p258_p6, %s1518_s27), 3  ;;  %v1673_v46 = vld [vmem:[#allocation2 + $0x20] sm:$0xff]  ;;  %s1788_s21 = smov 32  }
  0x10   : > { %s1830_s28 = sshll.u32 %s2162_s27, 3  ;;  %v284_v11 = vadd.s32 8, %v1841_v10  ;;  %v289_v12 = vand.u32 15, %v1841_v10  ;;  %vm360_vm2 = vcmp.lt.s32.totalorder %v1841_v10, 1  ;;  %vm383_vm4 = vcmp.lt.s32.totalorder %v1841_v10, 7  ;;  %v1677_v45 = vld [vmem:[#allocation2 + $0x40] sm:$0xff] }
  0x11   : > { %s261_s6 = scalar_lea.vmem %s2155_s0, %s1830_s28  ;;  %351 = vmatpush.bf16.msra.mxu0 %v1669_v1  ;;  %s267_s26 = scalar_lea.vmem %s2156_s1, %s1830_s28 }
  0x12   : > { %v321_v2 = vld [vmem:[%s261_s6] sm:$0xff]  ;;  %v322_v3 = vld [vmem:[%s261_s6 + $0x8] sm:$0xff]  ;;  %430 = vmatpush.bf16.msra.mxu1 %v1671_v8  ;;  %v296_v16 = vand.u32 15, %v284_v11  ;;  %vm309_vm1 = vcmp.ne.s32.totalorder %v289_v12, 0  ;;  %508 = vmatpush.bf16.msra.mxu2 %v1673_v46  ;;  %v1676_v12 = vld [vmem:[#allocation2 + $0x38] sm:$0xff]  ;;  %s1990_s30 = scalar_lea.vmem %s2160_s5, %s1830_s28  ;;  %s273_s24 = scalar_lea.vmem %s2159_s4, %s1830_s28 }
  0x13   : > { %v323_v4 = vpack.c.bf16 %v322_v3, %v321_v2  ;;  %v1846_v19 = vsel %vm309_vm1, 1.0, %v1787_v18  ;;  %581 = vmatpush.bf16.msra.mxu3 %v1676_v12 }
  0x14   : > { %vm316_vm3 = vcmp.ne.s32.totalorder %v296_v16, 15 }
  0x15   : > { %1536 = vmatmul.msk.bf16.vlgmr.msra.gmra.mxu0 %vm340_vm0, %v323_v4  ;;  %v1852_v23 = vsel %vm316_vm3, 1.0, %v1787_v18 }
  0x92   : > { %v353_v5 = vpop.f32.mrf.mxu0 }
  0x93   : > { %367 = vrot.lane.b32.xlu1 %v353_v5, %s1785_s7  ;;  %375 = vrot.lane.b32.xlu0 %v353_v5, %s1786_s8  ;;  %v358_v17 = vrot.slane %v353_v5, 7 }
  0x9a   : > { %v355_v6 = vpop.f32.mrf.mxu0 }
  0x9b   : > { %369 = vrot.lane.b32.xlu1 %v355_v6, %s1785_s7  ;;  %377 = vrot.lane.b32.xlu0 %v355_v6, %s1786_s8  ;;  %v359_v15 = vrot.slane %v355_v6, 7 }
  0x9d   : > { %v362_v20 = vsel %vm360_vm2, %v359_v15, %v358_v17  ;;  %v361_v29 = vsel %vm360_vm2, %v358_v17, %v359_v15 }
  0x9e   : > { %v363_v21 = vmul.f32 %v1846_v19, %v362_v20 }
 0x105   : > { %v368_v13 = vpop.permute.xlu1 %367  ;;  %v376_v14 = vpop.permute.xlu0 %375 }
 0x106   : > { %v381_v24 = vrot.slane %v376_v14, 1  ;;  %v373_v27 = vadd.f32 %v368_v13, %v363_v21  ;;  %v1675_v13 = vld [vmem:[#allocation2 + $0x30] sm:$0xff] }
 0x107   : > { %582 = vmatpush.bf16.msra.mxu3 %v1675_v13 }
 0x10d   : > { %v378_v22 = vpop.permute.xlu0 %377  ;;  %v370_v25 = vpop.permute.xlu1 %369 }
 0x10e   : > { %v382_v26 = vrot.slane %v378_v22, 1  ;;  %v374_v32 = vadd.f32 %v370_v25, %v361_v29 }
 0x110   : > { %v384_v30 = vsel %vm383_vm4, %v381_v24, %v382_v26  ;;  %v385_v31 = vsel %vm383_vm4, %v382_v26, %v381_v24 }
 0x111   : > { %v387_v33 = vmul.f32 %v1852_v23, %v385_v31  ;;  %v388_v34 = vadd.f32 %v384_v30, %v373_v27  ;;  %v1724_v27 = vld [vmem:[%s2158_s3 + $0x2] ss:$0 sm:$0xff] }
 0x113   : > { %v389_v35 = vadd.f32 %v387_v33, %v374_v32  ;;  %v394_v36 = vadd.f32 %v1722_v28, %v388_v34 }
 0x115   : > { %v395_v37 = vadd.f32 %v1722_v28, %v389_v35  ;;  %v398_v38 = vmul.f32 0.2, %v394_v36  ;;  %vm396_vm5 = vcmp.ge.f32.partialorder %v394_v36, 0.0 }
 0x117   : > { %vm397_vm6 = vcmp.ge.f32.partialorder %v395_v37, 0.0  ;;  %v399_v39 = vmul.f32 0.2, %v395_v37  ;;  %v1864_v40 = vsel %vm396_vm5, %v394_v36, %v398_v38 }
 0x119   : > { %v1866_v41 = vsel %vm397_vm6, %v395_v37, %v399_v39 }
 0x11a   : > { %v402_v42 = vpack.c.bf16 %v1866_v41, %v1864_v40 }
 0x11c   : > { %1545 = vmatmul.msk.bf16.vlgmr.msra.gmra.mxu1 %vm340_vm0, %v402_v42 }
 0x199   : > { %v432_v43 = vpop.f32.mrf.mxu1 }
 0x19a   : > { %445 = vrot.lane.b32.xlu0 %v432_v43, %s1785_s7  ;;  %453 = vrot.lane.b32.xlu2 %v432_v43, %s1786_s8  ;;  %v437_v49 = vrot.slane %v432_v43, 7 }
 0x1a1   : > { %v434_v44 = vpop.f32.mrf.mxu1 }
 0x1a2   : > { %447 = vrot.lane.b32.xlu1 %v434_v44, %s1785_s7  ;;  %455 = vrot.lane.b32.xlu2 %v434_v44, %s1786_s8  ;;  %v438_v48 = vrot.slane %v434_v44, 7  ;;  %v1678_v44 = vld [vmem:[#allocation2 + $0x48] sm:$0xff] }
 0x1a3   : > { %659 = vmatpush.bf16.msrb.mxu0 %v1678_v44  ;;  %v1681_v44 = vld [vmem:[#allocation2 + $0x60] sm:$0xff] }
 0x1a4   : > { %v440_v50 = vsel %vm360_vm2, %v438_v48, %v437_v49  ;;  %v439_v62 = vsel %vm360_vm2, %v437_v49, %v438_v48 }
 0x1a5   : > { %v441_v52 = vmul.f32 %v1846_v19, %v440_v50 }
 0x1a7   : > { %660 = vmatpush.bf16.msrb.mxu0 %v1677_v45 }
 0x1f4   : > { %v454_v47 = vpop.permute.xlu2 %453 }
 0x1f5   : > { %v459_v56 = vrot.slane %v454_v47, 1 }
 0x1fc   : > { %v456_v51 = vpop.permute.xlu2 %455 }
 0x1fd   : > { %v460_v53 = vrot.slane %v456_v51, 1 }
 0x1ff   : > { %v461_v57 = vsel %vm383_vm4, %v459_v56, %v460_v53  ;;  %v462_v60 = vsel %vm383_vm4, %v460_v53, %v459_v56 }
 0x200   : > { %v464_v1 = vmul.f32 %v1852_v23, %v462_v60 }
 0x20c   : > { %v446_v54 = vpop.permute.xlu0 %445 }
 0x20d   : > { %v451_v55 = vadd.f32 %v446_v54, %v441_v52 }
 0x20f   : > { %v465_v59 = vadd.f32 %v461_v57, %v451_v55  ;;  %v1725_v55 = vld [vmem:[%s2158_s3 + $0x3] ss:$0 sm:$0xff] }
 0x211   : > { %v472_v63 = vadd.f32 %v1723_v58, %v465_v59 }
 0x213   : > { %v476_v3 = vmul.f32 0.2, %v472_v63  ;;  %vm474_vm7 = vcmp.ge.f32.partialorder %v472_v63, 0.0 }
 0x214   : > { %v448_v61 = vpop.permute.xlu1 %447 }
 0x215   : > { %v452_v0 = vadd.f32 %v448_v61, %v439_v62  ;;  %v478_v6 = vsel %vm474_vm7, %v472_v63, %v476_v3 }
 0x217   : > { %v466_v2 = vadd.f32 %v464_v1, %v452_v0 }
 0x219   : > { %v473_v4 = vadd.f32 %v1723_v58, %v466_v2 }
 0x21b   : > { %v477_v5 = vmul.f32 0.2, %v473_v4  ;;  %vm475_vm8 = vcmp.ge.f32.partialorder %v473_v4, 0.0 }
 0x21d   : > { %v479_v7 = vsel %vm475_vm8, %v473_v4, %v477_v5  ;;  %vm859_vm8 = vcmask 785920  }
 0x21e   : > { %v480_v8 = vpack.c.bf16 %v479_v7, %v478_v6 }
 0x220   : > { %1555 = vmatmul.msk.bf16.vlgmr.msra.gmra.mxu2 %vm340_vm0, %v480_v8  ;;  %v1680_v8 = vld [vmem:[#allocation2 + $0x58] sm:$0xff] }
 0x221   : > { %737 = vmatpush.bf16.msrb.mxu1 %v1680_v8 }
 0x2a3   : > { %v510_v9 = vpop.f32.mrf.mxu2 }
 0x2a4   : > { %523 = vrot.lane.b32.xlu1 %v510_v9, %s1785_s7  ;;  %531 = vrot.lane.b32.xlu2 %v510_v9, %s1786_s8  ;;  %v515_v16 = vrot.slane %v510_v9, 7  ;;  %v1679_v9 = vld [vmem:[#allocation2 + $0x50] sm:$0xff] }
 0x2a5   : > { %738 = vmatpush.bf16.msrb.mxu1 %v1679_v9 }
 0x2ab   : > { %v512_v11 = vpop.f32.mrf.mxu2 }
 0x2ac   : > { %525 = vrot.lane.b32.xlu2 %v512_v11, %s1785_s7  ;;  %533 = vrot.lane.b32.xlu0 %v512_v11, %s1786_s8  ;;  %v516_v15 = vrot.slane %v512_v11, 7 }
 0x2ae   : > { %v518_v17 = vsel %vm360_vm2, %v516_v15, %v515_v16  ;;  %v517_v28 = vsel %vm360_vm2, %v515_v16, %v516_v15 }
 0x2af   : > { %v519_v20 = vmul.f32 %v1846_v19, %v518_v17 }
 0x2fe   : > { %v532_v14 = vpop.permute.xlu2 %531 }
 0x2ff   : > { %v537_v22 = vrot.slane %v532_v14, 1 }
 0x306   : > { %v526_v24 = vpop.permute.xlu2 %525 }
 0x307   : > { %v530_v31 = vadd.f32 %v526_v24, %v517_v28 }
 0x316   : > { %v524_v18 = vpop.permute.xlu1 %523 }
 0x317   : > { %v529_v26 = vadd.f32 %v524_v18, %v519_v20 }
 0x31e   : > { %v534_v21 = vpop.permute.xlu0 %533 }
 0x31f   : > { %v538_v25 = vrot.slane %v534_v21, 1 }
 0x321   : > { %v539_v29 = vsel %vm383_vm4, %v537_v22, %v538_v25  ;;  %v540_v30 = vsel %vm383_vm4, %v538_v25, %v537_v22  ;;  %v1726_v25 = vld [vmem:[%s2158_s3 + $0x4] ss:$0 sm:$0xff] }
 0x322   : > { %v542_v32 = vmul.f32 %v1852_v23, %v540_v30  ;;  %v543_v33 = vadd.f32 %v539_v29, %v529_v26 }
 0x324   : > { %v544_v34 = vadd.f32 %v542_v32, %v530_v31  ;;  %v550_v35 = vadd.f32 %v1724_v27, %v543_v33 }
 0x326   : > { %v551_v36 = vadd.f32 %v1724_v27, %v544_v34  ;;  %v552_v37 = vadd.f32 %v550_v35, %v1864_v40 }
 0x328   : > { %v553_v38 = vadd.f32 %v551_v36, %v1866_v41 }
 0x32a   : > { %v554_v39 = vpack.c.bf16 %v553_v38, %v552_v37 }
 0x32c   : > { %1565 = vmatmul.msk.bf16.vlgmr.msra.gmra.mxu3 %vm340_vm0, %v554_v39 }
 0x3af   : > { %v584_v42 = vpop.f32.mrf.mxu3 }
 0x3b0   : > { %597 = vrot.lane.b32.xlu2 %v584_v42, %s1785_s7  ;;  %605 = vrot.lane.b32.xlu0 %v584_v42, %s1786_s8  ;;  %v589_v41 = vrot.slane %v584_v42, 7 }
 0x3b7   : > { %v586_v43 = vpop.f32.mrf.mxu3 }
 0x3b8   : > { %599 = vrot.lane.b32.xlu0 %v586_v43, %s1785_s7  ;;  %607 = vrot.lane.b32.xlu1 %v586_v43, %s1786_s8  ;;  %v590_v46 = vrot.slane %v586_v43, 7  ;;  %v1682_v43 = vld [vmem:[#allocation2 + $0x68] sm:$0xff] }
 0x3b9   : > { %811 = vmatpush.bf16.msrb.mxu2 %v1682_v43 }
 0x3ba   : > { %v592_v47 = vsel %vm360_vm2, %v590_v46, %v589_v41  ;;  %v591_v56 = vsel %vm360_vm2, %v589_v41, %v590_v46 }
 0x3bb   : > { %v593_v49 = vmul.f32 %v1846_v19, %v592_v47 }
 0x3bd   : > { %812 = vmatpush.bf16.msrb.mxu2 %v1681_v44 }
 0x40a   : > { %v598_v48 = vpop.permute.xlu2 %597 }
 0x40b   : > { %v603_v54 = vadd.f32 %v598_v48, %v593_v49 }
 0x422   : > { %v606_v40 = vpop.permute.xlu0 %605 }
 0x423   : > { %v611_v51 = vrot.slane %v606_v40, 1 }
 0x42a   : > { %v608_v50 = vpop.permute.xlu1 %607  ;;  %v600_v52 = vpop.permute.xlu0 %599 }
 0x42b   : > { %v612_v53 = vrot.slane %v608_v50, 1  ;;  %v604_v59 = vadd.f32 %v600_v52, %v591_v56 }
 0x42d   : > { %v613_v57 = vsel %vm383_vm4, %v611_v51, %v612_v53  ;;  %v614_v58 = vsel %vm383_vm4, %v612_v53, %v611_v51 }
 0x42e   : > { %v616_v60 = vmul.f32 %v1852_v23, %v614_v58  ;;  %v617_v61 = vadd.f32 %v613_v57, %v603_v54  ;;  %v1727_v54 = vld [vmem:[%s2158_s3 + $0x5] ss:$0 sm:$0xff] }
 0x430   : > { %v618_v62 = vadd.f32 %v616_v60, %v604_v59  ;;  %v624_v63 = vadd.f32 %v1725_v55, %v617_v61 }
 0x432   : > { %v625_v0 = vadd.f32 %v1725_v55, %v618_v62  ;;  %v628_v1 = vmul.f32 0.2, %v624_v63  ;;  %vm626_vm9 = vcmp.ge.f32.partialorder %v624_v63, 0.0 }
 0x434   : > { %vm627_vm10 = vcmp.ge.f32.partialorder %v625_v0, 0.0  ;;  %v629_v2 = vmul.f32 0.2, %v625_v0  ;;  %v1926_v3 = vsel %vm626_vm9, %v624_v63, %v628_v1 }
 0x436   : > { %v1928_v4 = vsel %vm627_vm10, %v625_v0, %v629_v2 }
 0x437   : > { %v632_v5 = vpack.c.bf16 %v1928_v4, %v1926_v3 }
 0x439   : > { %1575 = vmatmul.msk.bf16.vlgmr.msrb.gmra.mxu0 %vm340_vm0, %v632_v5  ;;  %v1684_v5 = vld [vmem:[#allocation2 + $0x78] sm:$0xff] }
 0x43a   : > { %889 = vmatpush.bf16.msrb.mxu3 %v1684_v5 }
 0x4b6   : > { %v662_v6 = vpop.f32.mrf.mxu0 }
 0x4b7   : > { %675 = vrot.lane.b32.xlu0 %v662_v6, %s1785_s7  ;;  %683 = vrot.lane.b32.xlu1 %v662_v6, %s1786_s8  ;;  %v667_v12 = vrot.slane %v662_v6, 7  ;;  %v1728_v6 = vld [vmem:[%s2158_s3 + $0x6] ss:$0 sm:$0xff] }
 0x4be   : > { %v664_v7 = vpop.f32.mrf.mxu0 }
 0x4bf   : > { %677 = vrot.lane.b32.xlu1 %v664_v7, %s1785_s7  ;;  %685 = vrot.lane.b32.xlu2 %v664_v7, %s1786_s8  ;;  %v668_v11 = vrot.slane %v664_v7, 7 }
 0x4c1   : > { %v670_v13 = vsel %vm360_vm2, %v668_v11, %v667_v12  ;;  %v669_v28 = vsel %vm360_vm2, %v667_v12, %v668_v11 }
 0x4c2   : > { %v671_v15 = vmul.f32 %v1846_v19, %v670_v13 }
 0x519   : > { %v686_v14 = vpop.permute.xlu2 %685 }
 0x51a   : > { %v690_v18 = vrot.slane %v686_v14, 1 }
 0x529   : > { %v676_v16 = vpop.permute.xlu0 %675  ;;  %v684_v17 = vpop.permute.xlu1 %683 }
 0x52a   : > { %v681_v20 = vadd.f32 %v676_v16, %v671_v15  ;;  %v689_v21 = vrot.slane %v684_v17, 1  ;;  %v1683_v16 = vld [vmem:[#allocation2 + $0x70] sm:$0xff]  ;;  %v826_v17 = vld [vmem:[%s267_s26] sm:$0xff] }
 0x52b   : > { %890 = vmatpush.bf16.msrb.mxu3 %v1683_v16 }
 0x52c   : > { %v691_v22 = vsel %vm383_vm4, %v689_v21, %v690_v18  ;;  %v692_v26 = vsel %vm383_vm4, %v690_v18, %v689_v21 }
 0x52d   : > { %v695_v24 = vadd.f32 %v691_v22, %v681_v20  ;;  %v694_v30 = vmul.f32 %v1852_v23, %v692_v26  ;;  %v827_v22 = vld [vmem:[%s267_s26 + $0x8] sm:$0xff] }
 0x52f   : > { %v702_v31 = vadd.f32 %v1726_v25, %v695_v24 }
 0x531   : > { %v678_v27 = vpop.permute.xlu1 %677  ;;  %v706_v34 = vmul.f32 0.2, %v702_v31  ;;  %vm704_vm11 = vcmp.ge.f32.partialorder %v702_v31, 0.0 }
 0x532   : > { %v682_v29 = vadd.f32 %v678_v27, %v669_v28 }
 0x533   : > { %v708_v36 = vsel %vm704_vm11, %v702_v31, %v706_v34  ;;  %v1685_v31 = vld [vmem:[#allocation2 + $0x80] sm:$0xff] }
 0x534   : > { %v696_v32 = vadd.f32 %v694_v30, %v682_v29  ;;  %v1686_v30 = vld [vmem:[#allocation2 + $0x88] sm:$0xff] }
 0x535   : > { %967 = vmatpush.bf16.msra.mxu0 %v1686_v30 }
 0x536   : > { %v703_v33 = vadd.f32 %v1726_v25, %v696_v32 }
 0x538   : > { %vm705_vm12 = vcmp.ge.f32.partialorder %v703_v33, 0.0  ;;  %v707_v35 = vmul.f32 0.2, %v703_v33 }
 0x539   : > { %968 = vmatpush.bf16.msra.mxu0 %v1685_v31  ;;  %v1689_v31 = vld [vmem:[#allocation2 + $0xa0] sm:$0xff] }
 0x53a   : > { %v709_v37 = vsel %vm705_vm12, %v703_v33, %v707_v35 }
 0x53b   : > { %v710_v38 = vpack.c.bf16 %v709_v37, %v708_v36 }
 0x53d   : > { %1585 = vmatmul.msk.bf16.vlgmr.msrb.gmra.mxu1 %vm340_vm0, %v710_v38 }
 0x5ba   : > { %v740_v39 = vpop.f32.mrf.mxu1 }
 0x5bb   : > { %753 = vrot.lane.b32.xlu1 %v740_v39, %s1785_s7  ;;  %761 = vrot.lane.b32.xlu2 %v740_v39, %s1786_s8  ;;  %v745_v46 = vrot.slane %v740_v39, 7 }
 0x5c2   : > { %v742_v42 = vpop.f32.mrf.mxu1 }
 0x5c3   : > { %755 = vrot.lane.b32.xlu2 %v742_v42, %s1785_s7  ;;  %763 = vrot.lane.b32.xlu0 %v742_v42, %s1786_s8  ;;  %v746_v40 = vrot.slane %v742_v42, 7 }
 0x5c5   : > { %v748_v41 = vsel %vm360_vm2, %v746_v40, %v745_v46  ;;  %v747_v55 = vsel %vm360_vm2, %v745_v46, %v746_v40 }
 0x5c6   : > { %v749_v48 = vmul.f32 %v1846_v19, %v748_v41 }
 0x615   : > { %v762_v45 = vpop.permute.xlu2 %761 }
 0x616   : > { %v767_v50 = vrot.slane %v762_v45, 1  ;;  %v1729_v45 = vld [vmem:[%s2158_s3 + $0x7] ss:$0 sm:$0xff] }
 0x61d   : > { %v756_v51 = vpop.permute.xlu2 %755 }
 0x61e   : > { %v760_v58 = vadd.f32 %v756_v51, %v747_v55 }
 0x62d   : > { %v754_v47 = vpop.permute.xlu1 %753 }
 0x62e   : > { %v759_v53 = vadd.f32 %v754_v47, %v749_v48 }
 0x635   : > { %v764_v49 = vpop.permute.xlu0 %763 }
 0x636   : > { %v768_v52 = vrot.slane %v764_v49, 1 }
 0x638   : > { %v769_v56 = vsel %vm383_vm4, %v767_v50, %v768_v52  ;;  %v770_v57 = vsel %vm383_vm4, %v768_v52, %v767_v50 }
 0x639   : > { %v772_v59 = vmul.f32 %v1852_v23, %v770_v57  ;;  %v773_v60 = vadd.f32 %v769_v56, %v759_v53 }
 0x63b   : > { %v774_v61 = vadd.f32 %v772_v59, %v760_v58  ;;  %v780_v62 = vadd.f32 %v1727_v54, %v773_v60  ;;  %v1688_v60 = vld [vmem:[#allocation2 + $0x98] sm:$0xff] }
 0x63c   : > { %1041 = vmatpush.bf16.msra.mxu1 %v1688_v60 }
 0x63d   : > { %v781_v63 = vadd.f32 %v1727_v54, %v774_v61  ;;  %v782_v0 = vadd.f32 %v780_v62, %v1926_v3  ;;  %v1687_v61 = vld [vmem:[#allocation2 + $0x90] sm:$0xff] }
 0x63f   : > { %v783_v1 = vadd.f32 %v781_v63, %v1928_v4 }
 0x640   : > { %1042 = vmatpush.bf16.msra.mxu1 %v1687_v61 }
 0x641   : > { %v784_v2 = vpack.c.bf16 %v783_v1, %v782_v0 }
 0x643   : > { %1595 = vmatmul.msk.bf16.vlgmr.msrb.gmra.mxu2 %vm340_vm0, %v784_v2 }
 0x6c6   : > { %v814_v7 = vpop.f32.mrf.mxu2 }
 0x6c7   : > { %v1974_v8 = vadd.f32 %v1728_v6, %v814_v7 }
 0x6c9   : > { %v828_v9 = vmul.f32 0.5, %v1974_v8 }
 0x6cb   : > { %v830_v11 = vmul.f32 1.442695, %v828_v9 }
 0x6cd   : > { %1736 = vpow2.f32 %v830_v11 }
 0x6ce   : > { %v816_v3 = vpop.f32.mrf.mxu2 }
 0x6cf   : > { %v1977_v4 = vadd.f32 %v1728_v6, %v816_v3 }
 0x6d1   : > { %v829_v12 = vmul.f32 0.5, %v1977_v4 }
 0x6d3   : > { %v1737_v13 = vpop.eup %1736  ;;  %v832_v14 = vmul.f32 1.442695, %v829_v12  ;;  %v1730_v12 = vld [vmem:[%s2158_s3 + $0x8] ss:$0 sm:$0xff] }
 0x6d4   : > { %836 = vrot.lane.b32.xlu0 %v1737_v13, %s1785_s7 }
 0x6d5   : > { %1738 = vpow2.f32 %v832_v14 }
 0x6db   : > { %v1739_v15 = vpop.eup %1738 }
 0x6dc   : > { %838 = vrot.lane.b32.xlu1 %v1739_v15, %s1785_s7 }
 0x746   : > { %v837_v18 = vpop.permute.xlu0 %836 }
 0x747   : > { %v842_v20 = vmul.f32 %v837_v18, %v826_v17 }
 0x749   : > { %v1993_v21 = vadd.f32 %v842_v20, %v1974_v8 }
 0x74b   : > { %846 = vst.msk [vmem:[%s1990_s30] sm:$0xff] %vm340_vm0, %v1993_v21 }
 0x74e   : > { %v839_v24 = vpop.permute.xlu1 %838 }
 0x74f   : > { %v843_v25 = vmul.f32 %v839_v24, %v827_v22 }
 0x751   : > { %v1999_v26 = vadd.f32 %v843_v25, %v1977_v4 }
 0x753   : > { %847 = vst.msk [vmem:[%s1990_s30 + $0x8] sm:$0xff] %vm340_vm0, %v1999_v26  ;;  %v862_v27 = vpack.c.bf16 %v1999_v26, %v1993_v21 }
 0x755   : > { %1605 = vmatmul.msk.bf16.vlgmr.msrb.gmra.mxu3 %vm340_vm0, %v862_v27 }
 0x7d8   : > { %v892_v28 = vpop.f32.mrf.mxu3 }
 0x7d9   : > { %905 = vrot.lane.b32.xlu1 %v892_v28, %s1785_s7  ;;  %913 = vrot.lane.b32.xlu2 %v892_v28, %s1786_s8  ;;  %v897_v34 = vrot.slane %v892_v28, 7 }
 0x7e0   : > { %v894_v29 = vpop.f32.mrf.mxu3 }
 0x7e1   : > { %907 = vrot.lane.b32.xlu2 %v894_v29, %s1785_s7  ;;  %915 = vrot.lane.b32.xlu0 %v894_v29, %s1786_s8  ;;  %v898_v33 = vrot.slane %v894_v29, 7 }
 0x7e3   : > { %v900_v35 = vsel %vm360_vm2, %v898_v33, %v897_v34  ;;  %v899_v40 = vsel %vm360_vm2, %v897_v34, %v898_v33 }
 0x7e4   : > { %v901_v37 = vmul.f32 %v1846_v19, %v900_v35 }
 0x833   : > { %v914_v32 = vpop.permute.xlu2 %913 }
 0x834   : > { %v919_v39 = vrot.slane %v914_v32, 1 }
 0x83b   : > { %v908_v42 = vpop.permute.xlu2 %907 }
 0x83c   : > { %v912_v47 = vadd.f32 %v908_v42, %v899_v40 }
 0x84b   : > { %v906_v36 = vpop.permute.xlu1 %905 }
 0x84c   : > { %v911_v44 = vadd.f32 %v906_v36, %v901_v37 }
 0x853   : > { %v916_v38 = vpop.permute.xlu0 %915 }
 0x854   : > { %v920_v43 = vrot.slane %v916_v38, 1 }
 0x856   : > { %v921_v46 = vsel %vm383_vm4, %v919_v39, %v920_v43  ;;  %v922_v41 = vsel %vm383_vm4, %v920_v43, %v919_v39 }
 0x857   : > { %v924_v48 = vmul.f32 %v1852_v23, %v922_v41  ;;  %v925_v49 = vadd.f32 %v921_v46, %v911_v44 }
 0x859   : > { %v926_v50 = vadd.f32 %v924_v48, %v912_v47  ;;  %v932_v51 = vadd.f32 %v1729_v45, %v925_v49 }
 0x85b   : > { %v933_v52 = vadd.f32 %v1729_v45, %v926_v50  ;;  %v936_v53 = vmul.f32 0.2, %v932_v51  ;;  %vm934_vm13 = vcmp.ge.f32.partialorder %v932_v51, 0.0  ;;  %v1731_v45 = vld [vmem:[%s2158_s3 + $0x9] ss:$0 sm:$0xff] }
 0x85d   : > { %vm935_vm14 = vcmp.ge.f32.partialorder %v933_v52, 0.0  ;;  %v937_v54 = vmul.f32 0.2, %v933_v52  ;;  %v938_v55 = vsel %vm934_vm13, %v932_v51, %v936_v53 }
 0x85f   : > { %v939_v56 = vsel %vm935_vm14, %v933_v52, %v937_v54 }
 0x860   : > { %v940_v57 = vpack.c.bf16 %v939_v56, %v938_v55 }
 0x862   : > { %1615 = vmatmul.msk.bf16.vlgmr.msra.gmra.mxu0 %vm340_vm0, %v940_v57 }
 0x8df   : > { %v970_v58 = vpop.f32.mrf.mxu0 }
 0x8e0   : > { %983 = vrot.lane.b32.xlu2 %v970_v58, %s1785_s7  ;;  %991 = vrot.lane.b32.xlu0 %v970_v58, %s1786_s8  ;;  %v975_v0 = vrot.slane %v970_v58, 7 }
 0x8e7   : > { %v972_v59 = vpop.f32.mrf.mxu0 }
 0x8e8   : > { %985 = vrot.lane.b32.xlu0 %v972_v59, %s1785_s7  ;;  %993 = vrot.lane.b32.xlu1 %v972_v59, %s1786_s8  ;;  %v976_v63 = vrot.slane %v972_v59, 7 }
 0x8ea   : > { %v978_v1 = vsel %vm360_vm2, %v976_v63, %v975_v0  ;;  %v977_v13 = vsel %vm360_vm2, %v975_v0, %v976_v63  ;;  %v1692_v63 = vld [vmem:[#allocation2 + $0xb8] sm:$0xff]  ;;  %v1691_v0 = vld [vmem:[#allocation2 + $0xb0] sm:$0xff] }
 0x8eb   : > { %v979_v5 = vmul.f32 %v1846_v19, %v978_v1  ;;  %1193 = vmatpush.bf16.msra.mxu3 %v1692_v63  ;;  %v1695_v63 = vld [vmem:[#allocation2 + $0xd0] sm:$0xff] }
 0x8ef   : > { %1194 = vmatpush.bf16.msra.mxu3 %v1691_v0 }
 0x93a   : > { %v984_v2 = vpop.permute.xlu2 %983 }
 0x93b   : > { %v989_v3 = vadd.f32 %v984_v2, %v979_v5 }
 0x952   : > { %v992_v62 = vpop.permute.xlu0 %991 }
 0x953   : > { %v997_v7 = vrot.slane %v992_v62, 1 }
 0x95a   : > { %v994_v6 = vpop.permute.xlu1 %993  ;;  %v986_v9 = vpop.permute.xlu0 %985 }
 0x95b   : > { %v998_v11 = vrot.slane %v994_v6, 1  ;;  %v990_v16 = vadd.f32 %v986_v9, %v977_v13 }
 0x95d   : > { %v999_v14 = vsel %vm383_vm4, %v997_v7, %v998_v11  ;;  %v1000_v15 = vsel %vm383_vm4, %v998_v11, %v997_v7 }
 0x95e   : > { %v1002_v17 = vmul.f32 %v1852_v23, %v1000_v15  ;;  %v1003_v18 = vadd.f32 %v999_v14, %v989_v3 }
 0x960   : > { %v1004_v20 = vadd.f32 %v1002_v17, %v990_v16  ;;  %v1010_v22 = vadd.f32 %v1730_v12, %v1003_v18 }
 0x962   : > { %v1011_v24 = vadd.f32 %v1730_v12, %v1004_v20  ;;  %v2043_v25 = vadd.f32 %v1010_v22, %v1993_v21  ;;  %v1690_v21 = vld [vmem:[#allocation2 + $0xa8] sm:$0xff] }
 0x963   : > { %1119 = vmatpush.bf16.msra.mxu2 %v1690_v21  ;;  %v1732_v12 = vld [vmem:[%s2158_s3 + $0xa] ss:$0 sm:$0xff] }
 0x964   : > { %v2046_v27 = vadd.f32 %v1011_v24, %v1999_v26 }
 0x966   : > { %v1014_v28 = vpack.c.bf16 %v2046_v27, %v2043_v25 }
 0x967   : > { %1120 = vmatpush.bf16.msra.mxu2 %v1689_v31 }
 0x968   : > { %1625 = vmatmul.msk.bf16.vlgmr.msra.gmra.mxu1 %vm340_vm0, %v1014_v28 }
 0x9e5   : > { %v1044_v29 = vpop.f32.mrf.mxu1 }
 0x9e6   : > { %1057 = vrot.lane.b32.xlu0 %v1044_v29, %s1785_s7  ;;  %1065 = vrot.lane.b32.xlu1 %v1044_v29, %s1786_s8  ;;  %v1049_v32 = vrot.slane %v1044_v29, 7 }
 0x9ed   : > { %v1046_v30 = vpop.f32.mrf.mxu1 }
 0x9ee   : > { %1059 = vrot.lane.b32.xlu1 %v1046_v30, %s1785_s7  ;;  %1067 = vrot.lane.b32.xlu2 %v1046_v30, %s1786_s8  ;;  %v1050_v26 = vrot.slane %v1046_v30, 7 }
 0x9f0   : > { %v1052_v33 = vsel %vm360_vm2, %v1050_v26, %v1049_v32  ;;  %v1051_v41 = vsel %vm360_vm2, %v1049_v32, %v1050_v26  ;;  %v1694_v32 = vld [vmem:[#allocation2 + $0xc8] sm:$0xff] }
 0x9f1   : > { %v1053_v35 = vmul.f32 %v1846_v19, %v1052_v33  ;;  %1271 = vmatpush.bf16.msrb.mxu0 %v1694_v32  ;;  %v1693_v33 = vld [vmem:[#allocation2 + $0xc0] sm:$0xff] }
 0x9f5   : > { %1272 = vmatpush.bf16.msrb.mxu0 %v1693_v33 }
 0xa48   : > { %v1068_v34 = vpop.permute.xlu2 %1067 }
 0xa49   : > { %v1072_v38 = vrot.slane %v1068_v34, 1 }
 0xa58   : > { %v1058_v36 = vpop.permute.xlu0 %1057  ;;  %v1066_v37 = vpop.permute.xlu1 %1065 }
 0xa59   : > { %v1063_v39 = vadd.f32 %v1058_v36, %v1053_v35  ;;  %v1071_v42 = vrot.slane %v1066_v37, 1 }
 0xa5b   : > { %v1073_v43 = vsel %vm383_vm4, %v1071_v42, %v1072_v38  ;;  %v1074_v40 = vsel %vm383_vm4, %v1072_v38, %v1071_v42 }
 0xa5c   : > { %v1077_v44 = vadd.f32 %v1073_v43, %v1063_v39  ;;  %v1076_v48 = vmul.f32 %v1852_v23, %v1074_v40 }
 0xa5e   : > { %v1084_v49 = vadd.f32 %v1731_v45, %v1077_v44  ;;  %v1733_v44 = vld [vmem:[%s2158_s3 + $0xb] ss:$0 sm:$0xff] }
 0xa60   : > { %v1060_v46 = vpop.permute.xlu1 %1059  ;;  %v1088_v52 = vmul.f32 0.2, %v1084_v49  ;;  %vm1086_vm15 = vcmp.ge.f32.partialorder %v1084_v49, 0.0 }
 0xa61   : > { %v1064_v47 = vadd.f32 %v1060_v46, %v1051_v41 }
 0xa62   : > { %v1090_v54 = vsel %vm1086_vm15, %v1084_v49, %v1088_v52 }
 0xa63   : > { %v1078_v50 = vadd.f32 %v1076_v48, %v1064_v47 }
 0xa65   : > { %v1085_v51 = vadd.f32 %v1731_v45, %v1078_v50 }
 0xa67   : > { %vm1087_vm1 = vcmp.ge.f32.partialorder %v1085_v51, 0.0  ;;  %v1089_v53 = vmul.f32 0.2, %v1085_v51 }
 0xa69   : > { %v1091_v55 = vsel %vm1087_vm1, %v1085_v51, %v1089_v53 }
 0xa6a   : > { %v1092_v56 = vpack.c.bf16 %v1091_v55, %v1090_v54 }
 0xa6c   : > { %1635 = vmatmul.msk.bf16.vlgmr.msra.gmra.mxu2 %vm340_vm0, %v1092_v56 }
 0xaef   : > { %v1122_v57 = vpop.f32.mrf.mxu2 }
 0xaf0   : > { %1135 = vrot.lane.b32.xlu1 %v1122_v57, %s1785_s7  ;;  %1143 = vrot.lane.b32.xlu2 %v1122_v57, %s1786_s8  ;;  %v1127_v59 = vrot.slane %v1122_v57, 7 }
 0xaf7   : > { %v1124_v58 = vpop.f32.mrf.mxu2 }
 0xaf8   : > { %v1128_v60 = vrot.slane %v1124_v58, 7  ;;  %1137 = vrot.lane.b32.xlu2 %v1124_v58, %s1785_s7  ;;  %1145 = vrot.lane.b32.xlu0 %v1124_v58, %s1786_s8 }
 0xafa   : > { %v1129_v61 = vsel %vm360_vm2, %v1127_v59, %v1128_v60  ;;  %v1130_v62 = vsel %vm360_vm2, %v1128_v60, %v1127_v59 }
 0xafb   : > { %v1131_v5 = vmul.f32 %v1846_v19, %v1130_v62  ;;  %v1696_v62 = vld [vmem:[#allocation2 + $0xd8] sm:$0xff] }
 0xafc   : > { %1349 = vmatpush.bf16.msrb.mxu1 %v1696_v62 }
 0xb00   : > { %1350 = vmatpush.bf16.msrb.mxu1 %v1695_v63 }
 0xb4a   : > { %v1144_v1 = vpop.permute.xlu2 %1143 }
 0xb4b   : > { %v1149_v7 = vrot.slane %v1144_v1, 1 }
 0xb52   : > { %v1138_v9 = vpop.permute.xlu2 %1137 }
 0xb53   : > { %v1142_v15 = vadd.f32 %v1138_v9, %v1129_v61 }
 0xb62   : > { %v1136_v2 = vpop.permute.xlu1 %1135 }
 0xb63   : > { %v1141_v3 = vadd.f32 %v1136_v2, %v1131_v5 }
 0xb6a   : > { %v1146_v6 = vpop.permute.xlu0 %1145 }
 0xb6b   : > { %v1150_v11 = vrot.slane %v1146_v6, 1 }
 0xb6d   : > { %v1151_v13 = vsel %vm383_vm4, %v1149_v7, %v1150_v11  ;;  %v1152_v14 = vsel %vm383_vm4, %v1150_v11, %v1149_v7 }
 0xb6e   : > { %v1154_v16 = vmul.f32 %v1852_v23, %v1152_v14  ;;  %v1155_v17 = vadd.f32 %v1151_v13, %v1141_v3 }
 0xb70   : > { %v1156_v18 = vadd.f32 %v1154_v16, %v1142_v15  ;;  %v1162_v20 = vadd.f32 %v1732_v12, %v1155_v17 }
 0xb72   : > { %v1163_v22 = vadd.f32 %v1732_v12, %v1156_v18  ;;  %v1164_v24 = vadd.f32 %v1162_v20, %v2043_v25  ;;  %v1734_v12 = vld [vmem:[%s2158_s3 + $0xc] ss:$0 sm:$0xff] }
 0xb74   : > { %v1165_v28 = vadd.f32 %v1163_v22, %v2046_v27 }
 0xb76   : > { %v1166_v29 = vpack.c.bf16 %v1165_v28, %v1164_v24 }
 0xb78   : > { %1645 = vmatmul.msk.bf16.vlgmr.msra.gmra.mxu3 %vm340_vm0, %v1166_v29 }
 0xbfb   : > { %v1196_v30 = vpop.f32.mrf.mxu3 }
 0xbfc   : > { %1209 = vrot.lane.b32.xlu2 %v1196_v30, %s1785_s7  ;;  %1217 = vrot.lane.b32.xlu0 %v1196_v30, %s1786_s8  ;;  %v1201_v31 = vrot.slane %v1196_v30, 7 }
 0xc03   : > { %v1198_v21 = vpop.f32.mrf.mxu3 }
 0xc04   : > { %v1202_v26 = vrot.slane %v1198_v21, 7  ;;  %1211 = vrot.lane.b32.xlu0 %v1198_v21, %s1785_s7  ;;  %1219 = vrot.lane.b32.xlu1 %v1198_v21, %s1786_s8 }
 0xc06   : > { %v1204_v25 = vsel %vm360_vm2, %v1202_v26, %v1201_v31  ;;  %v1203_v27 = vsel %vm360_vm2, %v1201_v31, %v1202_v26 }
 0xc07   : > { %v1205_v36 = vmul.f32 %v1846_v19, %v1204_v25 }
 0xc56   : > { %v1210_v35 = vpop.permute.xlu2 %1209 }
 0xc57   : > { %v1215_v43 = vadd.f32 %v1210_v35, %v1205_v36 }
 0xc6e   : > { %v1218_v34 = vpop.permute.xlu0 %1217 }
 0xc6f   : > { %v1223_v38 = vrot.slane %v1218_v34, 1 }
 0xc76   : > { %v1220_v37 = vpop.permute.xlu1 %1219  ;;  %v1212_v39 = vpop.permute.xlu0 %1211 }
 0xc77   : > { %v1224_v42 = vrot.slane %v1220_v37, 1  ;;  %v1216_v46 = vadd.f32 %v1212_v39, %v1203_v27 }
 0xc79   : > { %v1225_v45 = vsel %vm383_vm4, %v1223_v38, %v1224_v42  ;;  %v1226_v40 = vsel %vm383_vm4, %v1224_v42, %v1223_v38  ;;  %v1735_v42 = vld [vmem:[%s2158_s3 + $0xd] ss:$0 sm:$0xff] }
 0xc7a   : > { %v1228_v41 = vmul.f32 %v1852_v23, %v1226_v40  ;;  %v1229_v47 = vadd.f32 %v1225_v45, %v1215_v43 }
 0xc7c   : > { %v1230_v48 = vadd.f32 %v1228_v41, %v1216_v46  ;;  %v1236_v49 = vadd.f32 %v1733_v44, %v1229_v47 }
 0xc7e   : > { %v1237_v50 = vadd.f32 %v1733_v44, %v1230_v48  ;;  %v1240_v51 = vmul.f32 0.2, %v1236_v49  ;;  %vm1238_vm3 = vcmp.ge.f32.partialorder %v1236_v49, 0.0 }
 0xc80   : > { %vm1239_vm5 = vcmp.ge.f32.partialorder %v1237_v50, 0.0  ;;  %v1241_v52 = vmul.f32 0.2, %v1237_v50  ;;  %v1242_v53 = vsel %vm1238_vm3, %v1236_v49, %v1240_v51 }
 0xc82   : > { %v1243_v54 = vsel %vm1239_vm5, %v1237_v50, %v1241_v52 }
 0xc83   : > { %v1244_v55 = vpack.c.bf16 %v1243_v54, %v1242_v53 }
 0xc85   : > { %1655 = vmatmul.msk.bf16.vlgmr.msrb.gmra.mxu0 %vm340_vm0, %v1244_v55 }
 0xd02   : > { %v1274_v56 = vpop.f32.mrf.mxu0 }
 0xd03   : > { %1287 = vrot.lane.b32.xlu0 %v1274_v56, %s1785_s7  ;;  %1295 = vrot.lane.b32.xlu1 %v1274_v56, %s1786_s8  ;;  %v1279_v58 = vrot.slane %v1274_v56, 7 }
 0xd0a   : > { %v1276_v57 = vpop.f32.mrf.mxu0 }
 0xd0b   : > { %v1280_v59 = vrot.slane %v1276_v57, 7  ;;  %1289 = vrot.lane.b32.xlu1 %v1276_v57, %s1785_s7  ;;  %1297 = vrot.lane.b32.xlu2 %v1276_v57, %s1786_s8 }
 0xd0d   : > { %v1282_v60 = vsel %vm360_vm2, %v1280_v59, %v1279_v58  ;;  %v1281_v61 = vsel %vm360_vm2, %v1279_v58, %v1280_v59 }
 0xd0e   : > { %v1283_v1 = vmul.f32 %v1846_v19, %v1282_v60 }
 0xd65   : > { %v1298_v0 = vpop.permute.xlu2 %1297 }
 0xd66   : > { %v1302_v6 = vrot.slane %v1298_v0, 1 }
 0xd75   : > { %v1288_v2 = vpop.permute.xlu0 %1287  ;;  %v1296_v5 = vpop.permute.xlu1 %1295 }
 0xd76   : > { %v1293_v7 = vadd.f32 %v1288_v2, %v1283_v1  ;;  %v1301_v9 = vrot.slane %v1296_v5, 1 }
 0xd78   : > { %v1303_v11 = vsel %vm383_vm4, %v1301_v9, %v1302_v6  ;;  %v1304_v13 = vsel %vm383_vm4, %v1302_v6, %v1301_v9 }
 0xd79   : > { %v1307_v3 = vadd.f32 %v1303_v11, %v1293_v7  ;;  %v1306_v16 = vmul.f32 %v1852_v23, %v1304_v13 }
 0xd7b   : > { %v1314_v17 = vadd.f32 %v1734_v12, %v1307_v3 }
 0xd7d   : > { %v1290_v14 = vpop.permute.xlu1 %1289  ;;  %v1318_v22 = vmul.f32 0.2, %v1314_v17  ;;  %vm1316_vm6 = vcmp.ge.f32.partialorder %v1314_v17, 0.0 }
 0xd7e   : > { %v1294_v15 = vadd.f32 %v1290_v14, %v1281_v61 }
 0xd7f   : > { %v1320_v28 = vsel %vm1316_vm6, %v1314_v17, %v1318_v22 }
 0xd80   : > { %v1308_v18 = vadd.f32 %v1306_v16, %v1294_v15 }
 0xd82   : > { %v1315_v20 = vadd.f32 %v1734_v12, %v1308_v18 }
 0xd84   : > { %vm1317_vm7 = vcmp.ge.f32.partialorder %v1315_v20, 0.0  ;;  %v1319_v24 = vmul.f32 0.2, %v1315_v20 }
 0xd86   : > { %v1321_v29 = vsel %vm1317_vm7, %v1315_v20, %v1319_v24 }
 0xd87   : > { %v1322_v30 = vpack.c.bf16 %v1321_v29, %v1320_v28 }
 0xd89   : > { %1665 = vmatmul.msk.bf16.vlgmr.msrb.gmra.mxu1 %vm340_vm0, %v1322_v30  ;;  %vm1394_vm0 = vcmask 97280  }
 0xe06   : > { %v1352_v21 = vpop.f32.mrf.mxu1 }
 0xe07   : > { %1365 = vrot.lane.b32.xlu1 %v1352_v21, %s1785_s7  ;;  %1373 = vrot.lane.b32.xlu2 %v1352_v21, %s1786_s8  ;;  %v1357_v26 = vrot.slane %v1352_v21, 7 }
 0xe0e   : > { %v1354_v31 = vpop.f32.mrf.mxu1 }
 0xe0f   : > { %v1358_v25 = vrot.slane %v1354_v31, 7  ;;  %852 = vrot.lane.b32.xlu1 %v1977_v4, %s1788_s21  ;;  %1367 = vrot.lane.b32.xlu2 %v1354_v31, %s1785_s7 }
 0xe10   : > { %1375 = vrot.lane.b32.xlu0 %v1354_v31, %s1786_s8 }
 0xe11   : > { %v1359_v27 = vsel %vm360_vm2, %v1357_v26, %v1358_v25  ;;  %v1360_v32 = vsel %vm360_vm2, %v1358_v25, %v1357_v26  ;;  %vm856_vm2 = vcmask 523520  }
 0xe12   : > { %v1361_v35 = vmul.f32 %v1846_v19, %v1360_v32 }
 0xe18   : > { %850 = vrot.lane.b32.xlu0 %v1974_v8, %s1788_s21 }
 0xe61   : > { %v1374_v33 = vpop.permute.xlu2 %1373 }
 0xe62   : > { %v1379_v37 = vrot.slane %v1374_v33, 1 }
 0xe69   : > { %v1368_v4 = vpop.permute.xlu2 %1367 }
 0xe6a   : > { %v1372_v44 = vadd.f32 %v1368_v4, %v1359_v27 }
 0xe79   : > { %v1366_v34 = vpop.permute.xlu1 %1365 }
 0xe7a   : > { %v1371_v39 = vadd.f32 %v1366_v34, %v1361_v35 }
 0xe81   : > { %v853_v10 = vpop.permute.xlu1 %852 }
 0xe82   : > { %v1376_v36 = vpop.permute.xlu0 %1375  ;;  %858 = vst.msk [vmem:[%s1990_s30 + $0x8] sm:$0xff] %vm856_vm2, %v853_v10 }
 0xe83   : > { %v1380_v38 = vrot.slane %v1376_v36, 1  ;;  %861 = vst.msk [vmem:[%s1990_s30 + $0x8] sm:$0xff] %vm859_vm8, %v853_v10 }
 0xe85   : > { %v1381_v43 = vsel %vm383_vm4, %v1379_v37, %v1380_v38  ;;  %v1382_v8 = vsel %vm383_vm4, %v1380_v38, %v1379_v37 }
 0xe86   : > { %v1384_v19 = vmul.f32 %v1852_v23, %v1382_v8  ;;  %v1385_v45 = vadd.f32 %v1381_v43, %v1371_v39 }
 0xe88   : > { %v1386_v40 = vadd.f32 %v1384_v19, %v1372_v44  ;;  %v1392_v46 = vadd.f32 %v1735_v42, %v1385_v45 }
 0xe8a   : > { %v1393_v41 = vadd.f32 %v1735_v42, %v1386_v40  ;;  %1395 = vst.msk [vmem:[%s273_s24] sm:$0xff] %vm1394_vm0, %v1392_v46  ;;  %v851_v47 = vpop.permute.xlu0 %850 }
 0xe8b   : > { %857 = vst.msk [vmem:[%s1990_s30] sm:$0xff] %vm856_vm2, %v851_v47 }
 0xe8c   : > { %1396 = vst.msk [vmem:[%s273_s24 + $0x8] sm:$0xff] %vm1394_vm0, %v1393_v41 }
 0xe8d   : > { %860 = vst.msk [vmem:[%s1990_s30] sm:$0xff] %vm859_vm8, %v851_v47 }
 0xe8e PF: > { %s17_s18 = sadd.s32 1, %s1780_s18  }
 0xe8f   : > { %p14_p7 = scmp.ge.s32.totalorder %s17_s18, 4  }
 0xe91   :  { %16 = sbr.rel (!%p14_p7) target bundleno = 1 (0x1), region = 112 }
 0xe96   :  { %1436 = vsyncpa [#allocation3], 1 }
 0xe97   :  { %1438 = vsyncpa [#allocation3 + $0x1], 1 }

</bundles_post_ra>
